<compile_context>
chip_gen: v7x
topology: tpu7x:2x2x1
jax: 0.10.0
libtpu: 0.0.40
codegen_flags: <defaults>
</compile_context>

<pallas_src>
import functools

import jax
import jax.numpy as jnp
from jax.experimental import pallas as pl
from jax.experimental.pallas import tpu as pltpu

BN_EPS = 1e-5
_LANE = 128


def _round_up(a, b):
    return (a + b - 1) // b * b


def _vmem_capacity_bytes():
    try:
        return int(pltpu.get_tpu_info().vmem_capacity_bytes)
    except Exception:
        return 64 * 1024 * 1024          # v7x per-TC VMEM: safe lower bound everywhere


def _partial_moments(h):
    """Per-tile [sum, sum of squares] over rows (f32) -> (1, 2, H)."""
    s = jnp.sum(h, axis=0, keepdims=True)
    sq = jnp.sum(h * h, axis=0, keepdims=True)
    return jnp.concatenate([s, sq], axis=0)[None, :, :]


def _bn_scale_shift(partials, n_valid, gamma, beta, pad_row=None, n_dead=0):
    """Combine per-tile moments -> fused BN scale/shift (tiny per-feature math).

    pad_row: the (1, H) value every zero-padded batch row contributed to the
    partial sums (None if padding contributes exactly zero).
    """
    # TODO(synk): E[x^2]-mean^2 in f32 is cancellation-prone for huge N / large
    # means; switch to a shifted (Chan) combine if that regime ever matters.
    sums = jnp.sum(partials, axis=0)                           # (2, H)
    if n_dead and pad_row is not None:
        corr = jnp.concatenate([pad_row, pad_row * pad_row], axis=0)
        sums = sums - float(n_dead) * corr
    mean = sums[0:1] / n_valid
    var = jnp.maximum(sums[1:2] / n_valid - mean * mean, 0.0)  # biased variance
    scale = gamma * jax.lax.rsqrt(var + BN_EPS)                # (1, H)
    shift = beta - mean * scale                                # (1, H)
    return scale, shift


# --------------------------------------------------------------------------
# Fused whole-batch-in-VMEM kernel (small / medium problems)
# --------------------------------------------------------------------------
def _fused_kernel(x_ref, w1_ref, g1_ref, be1_ref, w2_ref, g2_ref, be2_ref,
                  w3_ref, scal_ref, out_ref, *, n_valid, n_pad):
    inv_n = 1.0 / n_valid
    h1 = jnp.dot(x_ref[...], w1_ref[...], preferred_element_type=jnp.float32)
    m1 = jnp.sum(h1, axis=0, keepdims=True) * inv_n            # padded rows are 0
    q1 = jnp.sum(h1 * h1, axis=0, keepdims=True) * inv_n
    v1 = jnp.maximum(q1 - m1 * m1, 0.0)
    sc1 = g1_ref[...] * jax.lax.rsqrt(v1 + BN_EPS)
    sh1 = be1_ref[...] - m1 * sc1
    a1 = jnp.maximum(h1 * sc1 + sh1, 0.0)
    if n_valid != n_pad:                                       # keep pad rows out of BN2
        rows = jax.lax.broadcasted_iota(jnp.int32, a1.shape, 0)
        a1 = jnp.where(rows < n_valid, a1, 0.0)
    h2 = jnp.dot(a1, w2_ref[...], preferred_element_type=jnp.float32)
    m2 = jnp.sum(h2, axis=0, keepdims=True) * inv_n
    q2 = jnp.sum(h2 * h2, axis=0, keepdims=True) * inv_n
    v2 = jnp.maximum(q2 - m2 * m2, 0.0)
    sc2 = g2_ref[...] * jax.lax.rsqrt(v2 + BN_EPS)
    sh2 = be2_ref[...] - m2 * sc2
    a2 = jnp.maximum(h2 * sc2 + sh2, 0.0)
    # (8, 2F) x (n_pad, 2F) contracting features -> (8, n_pad), lane-dense.
    s = jax.lax.dot_general(w3_ref[...], a2,
                            dimension_numbers=(((1,), (1,)), ((), ())),
                            preferred_element_type=jnp.float32)
    s0 = s[0:1, :] + scal_ref[0, 0]                            # + b3
    out_ref[...] = scal_ref[0, 1] * jax.nn.sigmoid(s0) + scal_ref[0, 2]


# --------------------------------------------------------------------------
# Tiled-pipeline kernels (large problems)
# --------------------------------------------------------------------------
def _l1_kernel(x_ref, w1_ref, h1_ref, m_ref, *, mm_dtype):
    x = x_ref[...].astype(mm_dtype)
    h1 = jnp.dot(x, w1_ref[...], preferred_element_type=jnp.float32)
    m_ref[...] = _partial_moments(h1)                 # f32, before any downcast
    h1_ref[...] = h1.astype(h1_ref.dtype)


def _l2_kernel(h1_ref, sc1_ref, sh1_ref, w2_ref, m_ref, *, mm_dtype):
    a1 = jnp.maximum(h1_ref[...].astype(jnp.float32) * sc1_ref[...] + sh1_ref[...], 0.0)
    h2 = jnp.dot(a1.astype(mm_dtype), w2_ref[...], preferred_element_type=jnp.float32)
    m_ref[...] = _partial_moments(h2)                 # h2 never touches HBM


def _l3_kernel(h1_ref, sc1_ref, sh1_ref, w2_ref, sc2_ref, sh2_ref, w3_ref,
               scal_ref, out_ref, *, mm_dtype):
    # Recompute a1 / h2 from h1 (cheaper than an HBM round trip of h2).
    a1 = jnp.maximum(h1_ref[...].astype(jnp.float32) * sc1_ref[...] + sh1_ref[...], 0.0)
    h2 = jnp.dot(a1.astype(mm_dtype), w2_ref[...], preferred_element_type=jnp.float32)
    a2 = jnp.maximum(h2 * sc2_ref[...] + sh2_ref[...], 0.0)
    s = jax.lax.dot_general(w3_ref[...], a2,
                            dimension_numbers=(((1,), (1,)), ((), ())),
                            preferred_element_type=jnp.float32)
    s0 = s[0:1, :] + scal_ref[0, 0]
    out_ref[...] = scal_ref[0, 1] * jax.nn.sigmoid(s0) + scal_ref[0, 2]


# --------------------------------------------------------------------------
# Wrappers
# --------------------------------------------------------------------------
def _head_consts(params, hdim):
    w3_rows = jnp.broadcast_to(params["w3"].reshape(1, hdim), (8, hdim))
    scalars = jnp.concatenate(
        [params["b3"].reshape(1, 1), jnp.exp(params["alpha_beta"]).reshape(1, 2)],
        axis=1).astype(jnp.float32)                    # (1, 3): [b3, e^alpha, e^beta]
    return w3_rows.astype(jnp.float32), scalars


def _fused_forward(x, params, *, n, f, hdim, n_pad, vmem_limit):
    if n_pad != n:
        x = jnp.pad(x, ((0, n_pad - n), (0, 0)))
    w3_rows, scalars = _head_consts(params, hdim)

    def full(shape):
        return pl.BlockSpec(shape, lambda i: (0,) * len(shape))

    out = pl.pallas_call(
        functools.partial(_fused_kernel, n_valid=n, n_pad=n_pad),
        grid=(1,),
        in_specs=[
            full((n_pad, f)), full((f, hdim)),
            full((1, hdim)), full((1, hdim)),
            full((hdim, hdim)), full((1, hdim)), full((1, hdim)),
            full((8, hdim)),
            pl.BlockSpec(memory_space=pltpu.MemorySpace.SMEM),
        ],
        out_specs=full((1, n_pad)),
        out_shape=jax.ShapeDtypeStruct((1, n_pad), jnp.float32),
        compiler_params=pltpu.CompilerParams(
            dimension_semantics=("arbitrary",), vmem_limit_bytes=vmem_limit),
    )(x, params["w1"], params["g1"], params["be1"], params["w2"],
      params["g2"], params["be2"], w3_rows, scalars)
    return out[0, :n].reshape(n, 1)


def _pick_tile(n_pad, hdim, act_bytes, mm_bytes, vmem_limit):
    """Largest tile_n (multiple of 128, divisor of n_pad) that fits the budget."""
    m = n_pad // _LANE
    # Per-step VMEM: (double-buffered) resident W2 + double-buffered act tile
    # + ~4 f32-sized temporaries of the tile in the layer-2/3 kernels.
    w2_bytes = 2 * hdim * hdim * mm_bytes
    per_row = hdim * (2 * act_bytes + 16)
    budget = int(0.6 * vmem_limit) - w2_bytes
    if budget < per_row * _LANE:
        # TODO(synk): K-tile W2 over hdim for very large widths (v7x 64 MiB).
        max_rows = _LANE
    else:
        max_rows = min(budget // per_row, 16 * _LANE)
    d_cap = max(1, max_rows // _LANE)
    if m >= 2:
        d_cap = min(d_cap, m // 2)        # >= 2 grid steps -> both v7x TCs busy
    d = max(dd for dd in range(1, d_cap + 1) if m % dd == 0)
    return _LANE * d, m // d


def _tiled_forward(x, params, *, n, f, hdim, n_pad, vmem_limit, act_dtype):
    act_dtype = jnp.dtype(act_dtype)
    mm_dtype = jnp.float32 if act_dtype == jnp.dtype(jnp.float32) else jnp.bfloat16
    act_bytes = act_dtype.itemsize
    mm_bytes = jnp.dtype(mm_dtype).itemsize
    tile_n, num_tiles = _pick_tile(n_pad, hdim, act_bytes, mm_bytes, vmem_limit)

    if n_pad != n:
        x = jnp.pad(x, ((0, n_pad - n), (0, 0)))       # zero rows -> exact BN1 moments
    w1_mm = params["w1"].astype(mm_dtype)
    w2_mm = params["w2"].astype(mm_dtype)
    w3_rows, scalars = _head_consts(params, hdim)

    cparams = pltpu.CompilerParams(
        dimension_semantics=("parallel",), vmem_limit_bytes=vmem_limit)
    act_spec = pl.BlockSpec((tile_n, hdim), lambda i: (i, 0))
    vec_spec = pl.BlockSpec((1, hdim), lambda i: (0, 0))
    w2_spec = pl.BlockSpec((hdim, hdim), lambda i: (0, 0))
    mom_spec = pl.BlockSpec((1, 2, hdim), lambda i: (i, 0, 0))
    mom_shape = jax.ShapeDtypeStruct((num_tiles, 2, hdim), jnp.float32)

    # ----- layer 1: h1 = x @ W1 (+ partial BN1 moments) -----
    h1, p1 = pl.pallas_call(
        functools.partial(_l1_kernel, mm_dtype=mm_dtype),
        grid=(num_tiles,),
        in_specs=[pl.BlockSpec((tile_n, f), lambda i: (i, 0)),
                  pl.BlockSpec((f, hdim), lambda i: (0, 0))],
        out_specs=[act_spec, mom_spec],
        out_shape=[jax.ShapeDtypeStruct((n_pad, hdim), act_dtype), mom_shape],
        compiler_params=cparams,
    )(x, w1_mm)
    sc1, sh1 = _bn_scale_shift(p1, n, params["g1"], params["be1"])

    # ----- layer 2: BN1+ReLU, @ W2 -> partial BN2 moments only -----
    p2 = pl.pallas_call(
        functools.partial(_l2_kernel, mm_dtype=mm_dtype),
        grid=(num_tiles,),
        in_specs=[act_spec, vec_spec, vec_spec, w2_spec],
        out_specs=mom_spec,
        out_shape=mom_shape,
        compiler_params=cparams,
    )(h1, sc1, sh1, w2_mm)

    # Padded h1 rows are exactly zero, so each contributed relu(sh1) @ W2 to the
    # BN2 partial sums; remove that analytically here instead of masking every
    # tile in the hot path.
    n_dead = n_pad - n
    pad_row = None
    if n_dead:
        pad_row = jnp.dot(jnp.maximum(sh1, 0.0).astype(mm_dtype), w2_mm,
                          preferred_element_type=jnp.float32)
    sc2, sh2 = _bn_scale_shift(p2, n, params["g2"], params["be2"],
                               pad_row=pad_row, n_dead=n_dead)

    # ----- layer 3: recompute a1/h2 from h1, BN2+ReLU, 2F->1, sigmoid, head -----
    out_lane = pl.pallas_call(
        functools.partial(_l3_kernel, mm_dtype=mm_dtype),
        grid=(num_tiles,),
        in_specs=[act_spec, vec_spec, vec_spec, w2_spec, vec_spec, vec_spec,
                  pl.BlockSpec((8, hdim), lambda i: (0, 0)),
                  pl.BlockSpec(memory_space=pltpu.MemorySpace.SMEM)],
        out_specs=pl.BlockSpec((1, tile_n), lambda i: (0, i)),
        out_shape=jax.ShapeDtypeStruct((1, n_pad), jnp.float32),
        compiler_params=cparams,
    )(h1, sc1, sh1, w2_mm, sc2, sh2, w3_rows, scalars)

    return out_lane[0, :n].reshape(n, 1)


@functools.partial(jax.jit, static_argnames=("act_dtype", "force_tiled"))
def relationscale_forward(x, params, *, act_dtype=jnp.bfloat16, force_tiled=False):
    """x: (N, in_features) float32 -> (N, 1) float32 (training-mode BN semantics)."""
    n, f = x.shape
    hdim = params["w1"].shape[1]                       # 2 * in_features
    n_pad = _round_up(n, _LANE)

    vmem_cap = _vmem_capacity_bytes()
    vmem_limit = min(int(0.75 * vmem_cap), 100 * 1024 * 1024)

    # Fused whole-batch-in-VMEM fast path: x + ~4 live f32 activations of the
    # padded batch + weights must fit comfortably on-chip.
    fused_bytes = 4 * (n_pad * (f + 5 * hdim + 1) + f * hdim + hdim * hdim + 10 * hdim)
    if not force_tiled and fused_bytes <= int(0.35 * vmem_cap):
        return _fused_forward(x, params, n=n, f=f, hdim=hdim, n_pad=n_pad,
                              vmem_limit=vmem_limit)
    return _tiled_forward(x, params, n=n, f=f, hdim=hdim, n_pad=n_pad,
                          vmem_limit=vmem_limit, act_dtype=act_dtype)


# --------------------------------------------------------------------------
# Parameters / reference
# --------------------------------------------------------------------------
def init_params(key, in_features):
    """Deterministic synthetic parameters matching the PyTorch module shapes."""
    f = in_features
    h = 2 * in_features
    k1, k2, k3, k4, k5, k6 = jax.random.split(key, 6)

    def lin_init(kw, kb, fan_in, fan_out):
        bound = 1.0 / jnp.sqrt(fan_in)
        w = jax.random.uniform(kw, (fan_in, fan_out), jnp.float32, -bound, bound)
        b = jax.random.uniform(kb, (1, fan_out), jnp.float32, -bound, bound)
        return w, b

    w1, b1 = lin_init(k1, k2, f, h)
    w2, b2 = lin_init(k3, k4, h, h)
    w3, b3 = lin_init(k5, k6, h, 1)

    return {
        "w1": w1, "b1": b1,   # b1/b2 kept for the reference; kernels drop them
        "g1": jnp.ones((1, h), jnp.float32), "be1": jnp.zeros((1, h), jnp.float32),
        "w2": w2, "b2": b2,
        "g2": jnp.ones((1, h), jnp.float32), "be2": jnp.zeros((1, h), jnp.float32),
        "w3": w3, "b3": b3,
        # alpha = 0, beta = 0 (nn.init.constant_)
        "alpha_beta": jnp.zeros((1, 2), jnp.float32),
    }


def _reference_forward(x, p):
    """Pure-JAX reference with the original (biased Linear) formulation."""
    def bn_relu(h, g, b):
        mu = jnp.mean(h, axis=0, keepdims=True)
        var = jnp.mean((h - mu) ** 2, axis=0, keepdims=True)
        return jnp.maximum((h - mu) / jnp.sqrt(var + BN_EPS) * g + b, 0.0)

    h = bn_relu(x @ p["w1"] + p["b1"], p["g1"], p["be1"])
    h = bn_relu(h @ p["w2"] + p["b2"], p["g2"], p["be2"])
    s = jax.nn.sigmoid(h @ p["w3"] + p["b3"])
    a, b = p["alpha_beta"][0, 0], p["alpha_beta"][0, 1]
    return jnp.exp(a) * s + jnp.exp(b)


if __name__ == "__main__":
    key = jax.random.PRNGKey(0)
    k_x, k_p = jax.random.split(key)

    batch = 200          # not a multiple of 128 -> exercises the padding paths
    in_features = 32

    x = jax.random.normal(k_x, (batch, in_features), jnp.float32)
    params = init_params(k_p, in_features)
    ref = _reference_forward(x, params)

    # 1) fused whole-batch-in-VMEM fast path (auto-selected at this size).
    out = jax.block_until_ready(relationscale_forward(x, params))
    assert out.shape == (batch, 1), out.shape
    assert jnp.allclose(out, ref, atol=1e-4, rtol=1e-4), (
        float(jnp.max(jnp.abs(out - ref))))

    # 2) tiled pipeline, f32 activations: tight check of the recompute path and
    #    the analytic padded-row BN2 moment correction (2 tiles of 128 rows).
    out_t32 = jax.block_until_ready(
        relationscale_forward(x, params, act_dtype=jnp.float32, force_tiled=True))
    assert jnp.allclose(out_t32, ref, atol=1e-3, rtol=1e-3), (
        float(jnp.max(jnp.abs(out_t32 - ref))))

    # 3) tiled pipeline, bf16 activations/weights (production default for the
    #    tiled path); looser tolerance only because of bf16 rounding.
    out_tbf = jax.block_until_ready(
        relationscale_forward(x, params, act_dtype=jnp.bfloat16, force_tiled=True))
    assert jnp.allclose(out_tbf, ref, atol=5e-2, rtol=5e-2), (
        float(jnp.max(jnp.abs(out_tbf - ref))))

    print("KERNEL_OK")
</pallas_src>

<mosaic_0001>
module attributes {stable_mosaic.version = 11 : i64} {
  func.func @_fused_kernel(%arg0: i32, %arg1: memref<256x32xf32, #tpu.memory_space<vmem>>, %arg2: memref<32x64xf32, #tpu.memory_space<vmem>>, %arg3: memref<1x64xf32, #tpu.memory_space<vmem>>, %arg4: memref<1x64xf32, #tpu.memory_space<vmem>>, %arg5: memref<64x64xf32, #tpu.memory_space<vmem>>, %arg6: memref<1x64xf32, #tpu.memory_space<vmem>>, %arg7: memref<1x64xf32, #tpu.memory_space<vmem>>, %arg8: memref<8x64xf32, #tpu.memory_space<vmem>>, %arg9: memref<1x3xf32, #tpu.memory_space<smem>>, %arg10: memref<1x256xf32, #tpu.memory_space<vmem>>) attributes {dimension_semantics = [#tpu.dimension_semantics<arbitrary>], iteration_bounds = array<i64: 1>, scalar_prefetch = 0 : i64, scratch_operands = 0 : i64, tpu.core_type = #tpu.core_type<tc>, window_params = [{pipeline_mode = #tpu.pipeline_mode<synchronous>, transform_indices = @transform_0, window_bounds = array<i64: 256, 32>}, {pipeline_mode = #tpu.pipeline_mode<synchronous>, transform_indices = @transform_1, window_bounds = array<i64: 32, 64>}, {pipeline_mode = #tpu.pipeline_mode<synchronous>, transform_indices = @transform_2, window_bounds = array<i64: 1, 64>}, {pipeline_mode = #tpu.pipeline_mode<synchronous>, transform_indices = @transform_3, window_bounds = array<i64: 1, 64>}, {pipeline_mode = #tpu.pipeline_mode<synchronous>, transform_indices = @transform_4, window_bounds = array<i64: 64, 64>}, {pipeline_mode = #tpu.pipeline_mode<synchronous>, transform_indices = @transform_5, window_bounds = array<i64: 1, 64>}, {pipeline_mode = #tpu.pipeline_mode<synchronous>, transform_indices = @transform_6, window_bounds = array<i64: 1, 64>}, {pipeline_mode = #tpu.pipeline_mode<synchronous>, transform_indices = @transform_7, window_bounds = array<i64: 8, 64>}, {transform_indices = @transform_8, window_bounds = array<i64: 1, 3>}, {pipeline_mode = #tpu.pipeline_mode<synchronous>, transform_indices = @transform_9, window_bounds = array<i64: 1, 256>}]} {
    %c0 = arith.constant 0 : index
    %c0_0 = arith.constant 0 : index
    %0 = vector.load %arg1[%c0, %c0_0] : memref<256x32xf32, #tpu.memory_space<vmem>>, vector<256x32xf32>
    %c0_1 = arith.constant 0 : index
    %c0_2 = arith.constant 0 : index
    %1 = vector.load %arg2[%c0_1, %c0_2] : memref<32x64xf32, #tpu.memory_space<vmem>>, vector<32x64xf32>
    %cst = arith.constant dense<0.000000e+00> : vector<256x64xf32>
    %2 = tpu.matmul %0, %1, %cst {dimension_numbers = #tpu.dot_dimension_numbers<[1], [0], [0], [1], [0, 0, 1, 1], [], []>} : vector<256x32xf32>, vector<32x64xf32>, vector<256x64xf32> -> vector<256x64xf32>
    %cst_3 = arith.constant dense<0.000000e+00> : vector<64xf32>
    %3 = vector.multi_reduction <add>, %2, %cst_3 [0] : vector<256x64xf32> to vector<64xf32>
    %4 = vector.shape_cast %3 : vector<64xf32> to vector<1x64xf32>
    %cst_4 = arith.constant 5.000000e-03 : f32
    %5 = vector.broadcast %cst_4 : f32 to vector<1x64xf32>
    %6 = arith.mulf %4, %5 : vector<1x64xf32>
    %7 = arith.mulf %2, %2 : vector<256x64xf32>
    %cst_5 = arith.constant dense<0.000000e+00> : vector<64xf32>
    %8 = vector.multi_reduction <add>, %7, %cst_5 [0] : vector<256x64xf32> to vector<64xf32>
    %9 = vector.shape_cast %8 : vector<64xf32> to vector<1x64xf32>
    %cst_6 = arith.constant 5.000000e-03 : f32
    %10 = vector.broadcast %cst_6 : f32 to vector<1x64xf32>
    %11 = arith.mulf %9, %10 : vector<1x64xf32>
    %12 = arith.mulf %6, %6 : vector<1x64xf32>
    %13 = arith.subf %11, %12 : vector<1x64xf32>
    %cst_7 = arith.constant 0.000000e+00 : f32
    %14 = vector.broadcast %cst_7 : f32 to vector<1x64xf32>
    %15 = arith.maximumf %13, %14 : vector<1x64xf32>
    %c0_8 = arith.constant 0 : index
    %c0_9 = arith.constant 0 : index
    %16 = vector.load %arg3[%c0_8, %c0_9] : memref<1x64xf32, #tpu.memory_space<vmem>>, vector<1x64xf32>
    %cst_10 = arith.constant 9.99999974E-6 : f32
    %17 = vector.broadcast %cst_10 : f32 to vector<1x64xf32>
    %18 = arith.addf %15, %17 : vector<1x64xf32>
    %19 = math.rsqrt %18 : vector<1x64xf32>
    %20 = arith.mulf %16, %19 : vector<1x64xf32>
    %c0_11 = arith.constant 0 : index
    %c0_12 = arith.constant 0 : index
    %21 = vector.load %arg4[%c0_11, %c0_12] : memref<1x64xf32, #tpu.memory_space<vmem>>, vector<1x64xf32>
    %22 = arith.mulf %6, %20 : vector<1x64xf32>
    %23 = arith.subf %21, %22 : vector<1x64xf32>
    %24 = vector.broadcast %20 : vector<1x64xf32> to vector<256x64xf32>
    %25 = arith.mulf %2, %24 : vector<256x64xf32>
    %26 = vector.broadcast %23 : vector<1x64xf32> to vector<256x64xf32>
    %27 = arith.addf %25, %26 : vector<256x64xf32>
    %cst_13 = arith.constant 0.000000e+00 : f32
    %28 = vector.broadcast %cst_13 : f32 to vector<256x64xf32>
    %29 = arith.maximumf %27, %28 : vector<256x64xf32>
    %30 = tpu.iota {dimensions = array<i32: 0>} : vector<256x64xi32>
    %c200_i32 = arith.constant 200 : i32
    %31 = vector.broadcast %c200_i32 : i32 to vector<256x64xi32>
    %32 = arith.cmpi slt, %30, %31 : vector<256x64xi32>
    %cst_14 = arith.constant 0.000000e+00 : f32
    %33 = vector.broadcast %cst_14 : f32 to vector<256x64xf32>
    %34 = arith.select %32, %29, %33 : vector<256x64xi1>, vector<256x64xf32>
    %c0_15 = arith.constant 0 : index
    %c0_16 = arith.constant 0 : index
    %35 = vector.load %arg5[%c0_15, %c0_16] : memref<64x64xf32, #tpu.memory_space<vmem>>, vector<64x64xf32>
    %cst_17 = arith.constant dense<0.000000e+00> : vector<256x64xf32>
    %36 = tpu.matmul %34, %35, %cst_17 {dimension_numbers = #tpu.dot_dimension_numbers<[1], [0], [0], [1], [0, 0, 1, 1], [], []>} : vector<256x64xf32>, vector<64x64xf32>, vector<256x64xf32> -> vector<256x64xf32>
    %cst_18 = arith.constant dense<0.000000e+00> : vector<64xf32>
    %37 = vector.multi_reduction <add>, %36, %cst_18 [0] : vector<256x64xf32> to vector<64xf32>
    %38 = vector.shape_cast %37 : vector<64xf32> to vector<1x64xf32>
    %cst_19 = arith.constant 5.000000e-03 : f32
    %39 = vector.broadcast %cst_19 : f32 to vector<1x64xf32>
    %40 = arith.mulf %38, %39 : vector<1x64xf32>
    %41 = arith.mulf %36, %36 : vector<256x64xf32>
    %cst_20 = arith.constant dense<0.000000e+00> : vector<64xf32>
    %42 = vector.multi_reduction <add>, %41, %cst_20 [0] : vector<256x64xf32> to vector<64xf32>
    %43 = vector.shape_cast %42 : vector<64xf32> to vector<1x64xf32>
    %cst_21 = arith.constant 5.000000e-03 : f32
    %44 = vector.broadcast %cst_21 : f32 to vector<1x64xf32>
    %45 = arith.mulf %43, %44 : vector<1x64xf32>
    %46 = arith.mulf %40, %40 : vector<1x64xf32>
    %47 = arith.subf %45, %46 : vector<1x64xf32>
    %cst_22 = arith.constant 0.000000e+00 : f32
    %48 = vector.broadcast %cst_22 : f32 to vector<1x64xf32>
    %49 = arith.maximumf %47, %48 : vector<1x64xf32>
    %c0_23 = arith.constant 0 : index
    %c0_24 = arith.constant 0 : index
    %50 = vector.load %arg6[%c0_23, %c0_24] : memref<1x64xf32, #tpu.memory_space<vmem>>, vector<1x64xf32>
    %cst_25 = arith.constant 9.99999974E-6 : f32
    %51 = vector.broadcast %cst_25 : f32 to vector<1x64xf32>
    %52 = arith.addf %49, %51 : vector<1x64xf32>
    %53 = math.rsqrt %52 : vector<1x64xf32>
    %54 = arith.mulf %50, %53 : vector<1x64xf32>
    %c0_26 = arith.constant 0 : index
    %c0_27 = arith.constant 0 : index
    %55 = vector.load %arg7[%c0_26, %c0_27] : memref<1x64xf32, #tpu.memory_space<vmem>>, vector<1x64xf32>
    %56 = arith.mulf %40, %54 : vector<1x64xf32>
    %57 = arith.subf %55, %56 : vector<1x64xf32>
    %58 = vector.broadcast %54 : vector<1x64xf32> to vector<256x64xf32>
    %59 = arith.mulf %36, %58 : vector<256x64xf32>
    %60 = vector.broadcast %57 : vector<1x64xf32> to vector<256x64xf32>
    %61 = arith.addf %59, %60 : vector<256x64xf32>
    %cst_28 = arith.constant 0.000000e+00 : f32
    %62 = vector.broadcast %cst_28 : f32 to vector<256x64xf32>
    %63 = arith.maximumf %61, %62 : vector<256x64xf32>
    %c0_29 = arith.constant 0 : index
    %c0_30 = arith.constant 0 : index
    %64 = vector.load %arg8[%c0_29, %c0_30] : memref<8x64xf32, #tpu.memory_space<vmem>>, vector<8x64xf32>
    %cst_31 = arith.constant dense<0.000000e+00> : vector<8x256xf32>
    %65 = tpu.matmul %64, %63, %cst_31 {dimension_numbers = #tpu.dot_dimension_numbers<[1], [1], [0], [0], [0, 0, 1, 0], [], []>} : vector<8x64xf32>, vector<256x64xf32>, vector<8x256xf32> -> vector<8x256xf32>
    %66 = vector.extract_strided_slice %65 {offsets = [0, 0], sizes = [1, 256], strides = [1, 1]} : vector<8x256xf32> to vector<1x256xf32>
    %c0_32 = arith.constant 0 : index
    %c0_33 = arith.constant 0 : index
    %67 = memref.load %arg9[%c0_32, %c0_33] : memref<1x3xf32, #tpu.memory_space<smem>>
    %68 = vector.broadcast %67 : f32 to vector<1x256xf32>
    %69 = arith.addf %66, %68 : vector<1x256xf32>
    %c0_34 = arith.constant 0 : index
    %c1 = arith.constant 1 : index
    %70 = memref.load %arg9[%c0_34, %c1] : memref<1x3xf32, #tpu.memory_space<smem>>
    %71 = arith.negf %69 : vector<1x256xf32>
    %72 = math.exp %71 : vector<1x256xf32>
    %cst_35 = arith.constant 1.000000e+00 : f32
    %73 = vector.broadcast %cst_35 : f32 to vector<1x256xf32>
    %74 = arith.addf %73, %72 : vector<1x256xf32>
    %75 = arith.divf %73, %74 : vector<1x256xf32>
    %76 = vector.broadcast %70 : f32 to vector<1x256xf32>
    %77 = arith.mulf %76, %75 : vector<1x256xf32>
    %c0_36 = arith.constant 0 : index
    %c2 = arith.constant 2 : index
    %78 = memref.load %arg9[%c0_36, %c2] : memref<1x3xf32, #tpu.memory_space<smem>>
    %79 = vector.broadcast %78 : f32 to vector<1x256xf32>
    %80 = arith.addf %77, %79 : vector<1x256xf32>
    %c0_37 = arith.constant 0 : index
    %c0_38 = arith.constant 0 : index
    %81 = vector.load %arg10[%c0_37, %c0_38] : memref<1x256xf32, #tpu.memory_space<vmem>>, vector<1x256xf32>
    tpu.vector_store %arg10[%c0_37, %c0_38], %80 {strides = array<i32>} : memref<1x256xf32, #tpu.memory_space<vmem>>, vector<1x256xf32>,
    return
  }
  func.func @transform_0(%arg0: i32) -> (i32, i32) {
    %c0_i32 = arith.constant 0 : i32
    %c0_i32_0 = arith.constant 0 : i32
    %c0_i32_1 = arith.constant 0 : i32
    return %c0_i32, %c0_i32_0 : i32, i32
  }
  func.func @transform_1(%arg0: i32) -> (i32, i32) {
    %c0_i32 = arith.constant 0 : i32
    %c0_i32_0 = arith.constant 0 : i32
    %c0_i32_1 = arith.constant 0 : i32
    return %c0_i32, %c0_i32_0 : i32, i32
  }
  func.func @transform_2(%arg0: i32) -> (i32, i32) {
    %c0_i32 = arith.constant 0 : i32
    %c0_i32_0 = arith.constant 0 : i32
    %c0_i32_1 = arith.constant 0 : i32
    return %c0_i32, %c0_i32_0 : i32, i32
  }
  func.func @transform_3(%arg0: i32) -> (i32, i32) {
    %c0_i32 = arith.constant 0 : i32
    %c0_i32_0 = arith.constant 0 : i32
    %c0_i32_1 = arith.constant 0 : i32
    return %c0_i32, %c0_i32_0 : i32, i32
  }
  func.func @transform_4(%arg0: i32) -> (i32, i32) {
    %c0_i32 = arith.constant 0 : i32
    %c0_i32_0 = arith.constant 0 : i32
    %c0_i32_1 = arith.constant 0 : i32
    return %c0_i32, %c0_i32_0 : i32, i32
  }
  func.func @transform_5(%arg0: i32) -> (i32, i32) {
    %c0_i32 = arith.constant 0 : i32
    %c0_i32_0 = arith.constant 0 : i32
    %c0_i32_1 = arith.constant 0 : i32
    return %c0_i32, %c0_i32_0 : i32, i32
  }
  func.func @transform_6(%arg0: i32) -> (i32, i32) {
    %c0_i32 = arith.constant 0 : i32
    %c0_i32_0 = arith.constant 0 : i32
    %c0_i32_1 = arith.constant 0 : i32
    return %c0_i32, %c0_i32_0 : i32, i32
  }
  func.func @transform_7(%arg0: i32) -> (i32, i32) {
    %c0_i32 = arith.constant 0 : i32
    %c0_i32_0 = arith.constant 0 : i32
    %c0_i32_1 = arith.constant 0 : i32
    return %c0_i32, %c0_i32_0 : i32, i32
  }
  func.func @transform_8(%arg0: i32) -> (i32, i32) {
    %c0_i32 = arith.constant 0 : i32
    %c0_i32_0 = arith.constant 0 : i32
    %c0_i32_1 = arith.constant 0 : i32
    return %c0_i32, %c0_i32_0 : i32, i32
  }
  func.func @transform_9(%arg0: i32) -> (i32, i32) {
    %c0_i32 = arith.constant 0 : i32
    %c0_i32_0 = arith.constant 0 : i32
    %c0_i32_1 = arith.constant 0 : i32
    return %c0_i32, %c0_i32_0 : i32, i32
  }
}

</mosaic_0001>

<bundles_post_ra>
// kernel: relationscale_forward.1
= control target key start
LH: loop header
LB: loop body
LE: loop exit
PB: predicated region body
PF: predicated region fallthrough
CT: control target
= control target key end

     0   :  { %14 = vsyncpa [#allocation3], 0  ;;  %s2868_s0 = inlined_call_operand.vmem [shape: f32[256,32], index: 0, kind: input, shape index: {}]   ;;  %s2869_s1 = inlined_call_operand.vmem [shape: f32[32,64], index: 1, kind: input, shape index: {}]   ;;  %s2870_s2 = inlined_call_operand.vmem [shape: f32[1,64], index: 2, kind: input, shape index: {}]   ;;  %s2871_s3 = inlined_call_operand.vmem [shape: f32[1,64], index: 3, kind: input, shape index: {}]   ;;  %s2872_s4 = inlined_call_operand.vmem [shape: f32[64,64], index: 4, kind: input, shape index: {}]   ;;  %s2873_s5 = inlined_call_operand.vmem [shape: f32[1,64], index: 5, kind: input, shape index: {}]   ;;  %s2874_s6 = inlined_call_operand.vmem [shape: f32[1,64], index: 6, kind: input, shape index: {}]   ;;  %s2875_s7 = inlined_call_operand.vmem [shape: f32[8,64], index: 7, kind: input, shape index: {}]   ;;  %s2876_s8 = inlined_call_operand.vmem [shape: f32[1,3], index: 8, kind: input, shape index: {}]   ;;  %s2877_s9 = inlined_call_operand.vmem [shape: f32[1,256], index: 9, kind: output, shape index: {}]  }
   0x1   :  { %s37_s11 = sshll.u32 %s2876_s8, 4  ;;  %s38_s11 = int_to_ptr.vmem [resolvable:$true] %s37_s11 }
   0x2   :  { %s2044_s12 = scalar_lea.vmem %s38_s11, 16  ;;  %p2049_p1 = scmp.lt.s32.totalorder %s38_s11, %s38_s11 }
   0x3   :  { %p2045_p0 = scmp.ne.s32.totalorder %s38_s11, %s2044_s12  ;;  %p2050_p2 = scmp.lt.s32.totalorder %s2044_s12, %s2044_s12 }
   0x5   :  { %p2051_p3 = por %p2050_p2, %p2049_p1 }
   0x7   :  { %p2052_p4 = pnand %p2051_p3, %p2045_p0 }
   0x9   :  { %2055 = shalt.err (!%p2052_p4)
}
   0xa   :  { %s2058_s13 = smov [#allocation2]  }
   0xb   :  { %40 = dma.vmem_to_smem %s38_s11, 16, %s2058_s13, [#allocation3]  }
   0xc   :  { %2056 = dma.done.wait [#allocation3], 16  }
   0xd   :  { %2057 = vsyncadd [#allocation3], 4294967280 }
   0xe   :  { %44 = sfence }
   0xf   :  { %v77_v0 = vld [vmem:[%s2869_s1] sm:$0xff]  ;;  %v78_v1 = vld [vmem:[%s2869_s1 + $0x8] sm:$0xff]  ;;  %v79_v2 = vld [vmem:[%s2869_s1 + $0x10] sm:$0xff]  ;;  %vm81_vm0 = vcmask 261120   ;;  %vm403_vm1 = vcmask 523264   ;;  %s1726_s15 = sld [smem:[#allocation2 + $0x2]] }
  0x10   :  { %v1957_v3 = vpack.c.bf16 %v78_v1, %v77_v0  ;;  %v80_v4 = vld [vmem:[%s2869_s1 + $0x18] sm:$0xff]  ;;  %v45_v5 = vld [vmem:[%s2868_s0] sm:$0xff]  ;;  %v46_v7 = vld [vmem:[%s2868_s0 + $0x8] sm:$0xff] }
  0x11   :  { %v1961_v6 = vpack.c.bf16 %v80_v4, %v79_v2  ;;  %1845 = vmatprep.mubr.msk.f32.mxu0 %vm81_vm0, %v45_v5  ;;  %v47_v8 = vld [vmem:[%s2868_s0 + $0x10] sm:$0xff]  ;;  %v48_v9 = vld [vmem:[%s2868_s0 + $0x18] sm:$0xff]  ;;  %v49_v10 = vld [vmem:[%s2868_s0 + $0x20] sm:$0xff] }
  0x12   :  { %1958 = vmatprep.subr.bf16.mxu0 %v1957_v3  ;;  %v50_v11 = vld [vmem:[%s2868_s0 + $0x28] sm:$0xff]  ;;  %v51_v12 = vld [vmem:[%s2868_s0 + $0x30] sm:$0xff]  ;;  %v52_v13 = vld [vmem:[%s2868_s0 + $0x38] sm:$0xff] }
  0x13   :  { %1960 = vmatpush3.bf16.msra.mxu0 %v1957_v3  ;;  %v53_v14 = vld [vmem:[%s2868_s0 + $0x40] sm:$0xff]  ;;  %v54_v15 = vld [vmem:[%s2868_s0 + $0x48] sm:$0xff]  ;;  %v55_v16 = vld [vmem:[%s2868_s0 + $0x50] sm:$0xff] }
  0x14   :  { %1962 = vmatprep.subr.bf16.mxu0 %v1961_v6  ;;  %v56_v17 = vld [vmem:[%s2868_s0 + $0x58] sm:$0xff]  ;;  %v57_v18 = vld [vmem:[%s2868_s0 + $0x60] sm:$0xff]  ;;  %v58_v19 = vld [vmem:[%s2868_s0 + $0x68] sm:$0xff] }
  0x15   :  { %v59_v20 = vld [vmem:[%s2868_s0 + $0x70] sm:$0xff]  ;;  %v60_v21 = vld [vmem:[%s2868_s0 + $0x78] sm:$0xff]  ;;  %v61_v22 = vld [vmem:[%s2868_s0 + $0x80] sm:$0xff] }
  0x16   :  { %v62_v23 = vld [vmem:[%s2868_s0 + $0x88] sm:$0xff]  ;;  %v63_v24 = vld [vmem:[%s2868_s0 + $0x90] sm:$0xff]  ;;  %v64_v25 = vld [vmem:[%s2868_s0 + $0x98] sm:$0xff] }
  0x17   :  { %1964 = vmatpush3.bf16.msra.mxu0 %v1961_v6  ;;  %v65_v26 = vld [vmem:[%s2868_s0 + $0xa0] sm:$0xff]  ;;  %v66_v27 = vld [vmem:[%s2868_s0 + $0xa8] sm:$0xff]  ;;  %v67_v28 = vld [vmem:[%s2868_s0 + $0xb0] sm:$0xff] }
  0x18   :  { %v68_v29 = vld [vmem:[%s2868_s0 + $0xb8] sm:$0xff]  ;;  %v69_v30 = vld [vmem:[%s2868_s0 + $0xc0] sm:$0xff]  ;;  %v70_v31 = vld [vmem:[%s2868_s0 + $0xc8] sm:$0xff] }
  0x19   :  { %v71_v32 = vld [vmem:[%s2868_s0 + $0xd0] sm:$0xff]  ;;  %v72_v33 = vld [vmem:[%s2868_s0 + $0xd8] sm:$0xff]  ;;  %v73_v34 = vld [vmem:[%s2868_s0 + $0xe0] sm:$0xff] }
  0x1a   :  { %1846 = vmatmul.mubr.msk.f32.vlgmr.msra.gmra.mrb[0].mxu0 %vm81_vm0, %v46_v7  ;;  %v74_v35 = vld [vmem:[%s2868_s0 + $0xe8] sm:$0xff]  ;;  %v75_v36 = vld [vmem:[%s2868_s0 + $0xf0] sm:$0xff]  ;;  %v76_v37 = vld [vmem:[%s2868_s0 + $0xf8] sm:$0xff] }
  0x1b   :  { %1848 = vmatprep.mubr.msk.f32.mxu0 %vm81_vm0, %v47_v8  ;;  %v791_v38 = vld [vmem:[%s2872_s4] sm:$0xff]  ;;  %v792_v39 = vld [vmem:[%s2872_s4 + $0x8] sm:$0xff]  ;;  %v793_v41 = vld [vmem:[%s2872_s4 + $0x10] sm:$0xff] }
  0x1c   :  { %v1965_v40 = vpack.c.bf16 %v792_v39, %v791_v38  ;;  %v794_v42 = vld [vmem:[%s2872_s4 + $0x18] sm:$0xff]  ;;  %v795_v44 = vld [vmem:[%s2872_s4 + $0x20] sm:$0xff]  ;;  %v796_v45 = vld [vmem:[%s2872_s4 + $0x28] sm:$0xff] }
  0x1d   :  { %v1969_v43 = vpack.c.bf16 %v794_v42, %v793_v41  ;;  %v1973_v46 = vpack.c.bf16 %v796_v45, %v795_v44  ;;  %v797_v47 = vld [vmem:[%s2872_s4 + $0x30] sm:$0xff]  ;;  %v798_v48 = vld [vmem:[%s2872_s4 + $0x38] sm:$0xff]  ;;  %vm2824_vm2 = vmpackc.low %vm403_vm1, %vm403_vm1 }
  0x1e   :  { %1849 = vmatmul.mubr.msk.f32.gmra.mrb[2].mxu0 %vm81_vm0, %v48_v9  ;;  %1966 = vmatprep.subr.bf16.mxu1 %v1965_v40  ;;  %v1977_v49 = vpack.c.bf16 %v798_v48, %v797_v47 }
  0x1f   :  { %1851 = vmatprep.mubr.msk.f32.mxu0 %vm81_vm0, %v49_v10  ;;  %1968 = vmatpush3.bf16.msra.mxu1 %v1965_v40 }
  0x20   :  { %1970 = vmatprep.subr.bf16.mxu1 %v1969_v43 }
  0x22   :  { %1852 = vmatmul.mubr.msk.f32.gmra.mrb[4].mxu0 %vm81_vm0, %v50_v11 }
  0x23   :  { %1854 = vmatprep.mubr.msk.f32.mxu0 %vm81_vm0, %v51_v12  ;;  %1972 = vmatpush3.bf16.msra.mxu1 %v1969_v43 }
  0x24   :  { %1974 = vmatprep.subr.bf16.mxu1 %v1973_v46 }
  0x26   :  { %1855 = vmatmul.mubr.msk.f32.gmra.mrb[6].mxu0 %vm81_vm0, %v52_v13 }
  0x27   :  { %1857 = vmatprep.mubr.msk.f32.mxu0 %vm81_vm0, %v53_v14  ;;  %1976 = vmatpush3.bf16.msra.mxu1 %v1973_v46 }
  0x28   :  { %1978 = vmatprep.subr.bf16.mxu1 %v1977_v49 }
  0x2a   :  { %1858 = vmatmul.mubr.msk.f32.gmra.mrb[8].mxu0 %vm81_vm0, %v54_v15 }
  0x2b   :  { %1860 = vmatprep.mubr.msk.f32.mxu0 %vm81_vm0, %v55_v16  ;;  %1980 = vmatpush3.bf16.msra.mxu1 %v1977_v49 }
  0x2e   :  { %1861 = vmatmul.mubr.msk.f32.gmra.mrb[10].mxu0 %vm81_vm0, %v56_v17 }
  0x2f   :  { %1863 = vmatprep.mubr.msk.f32.mxu0 %vm81_vm0, %v57_v18 }
  0x32   :  { %1864 = vmatmul.mubr.msk.f32.gmra.mrb[12].mxu0 %vm81_vm0, %v58_v19 }
  0x33   :  { %1866 = vmatprep.mubr.msk.f32.mxu0 %vm81_vm0, %v59_v20 }
  0x36   :  { %1867 = vmatmul.mubr.msk.f32.gmra.mrb[14].mxu0 %vm81_vm0, %v60_v21 }
  0x37   :  { %1869 = vmatprep.mubr.msk.f32.mxu0 %vm81_vm0, %v61_v22 }
  0x3a   :  { %1870 = vmatmul.mubr.msk.f32.gmra.mrb[16].mxu0 %vm81_vm0, %v62_v23 }
  0x3b   :  { %1872 = vmatprep.mubr.msk.f32.mxu0 %vm81_vm0, %v63_v24 }
  0x3e   :  { %1873 = vmatmul.mubr.msk.f32.gmra.mrb[18].mxu0 %vm81_vm0, %v64_v25 }
  0x3f   :  { %1875 = vmatprep.mubr.msk.f32.mxu0 %vm81_vm0, %v65_v26 }
  0x42   :  { %1876 = vmatmul.mubr.msk.f32.gmra.mrb[20].mxu0 %vm81_vm0, %v66_v27 }
  0x43   :  { %1878 = vmatprep.mubr.msk.f32.mxu0 %vm81_vm0, %v67_v28 }
  0x46   :  { %1879 = vmatmul.mubr.msk.f32.gmra.mrb[22].mxu0 %vm81_vm0, %v68_v29 }
  0x47   :  { %1881 = vmatprep.mubr.msk.f32.mxu0 %vm81_vm0, %v69_v30 }
  0x4a   :  { %1882 = vmatmul.mubr.msk.f32.gmra.mrb[24].mxu0 %vm81_vm0, %v70_v31 }
  0x4b   :  { %1884 = vmatprep.mubr.msk.f32.mxu0 %vm81_vm0, %v71_v32 }
  0x4e   :  { %1885 = vmatmul.mubr.msk.f32.gmra.mrb[26].mxu0 %vm81_vm0, %v72_v33 }
  0x4f   :  { %1887 = vmatprep.mubr.msk.f32.mxu0 %vm81_vm0, %v73_v34 }
  0x52   :  { %1888 = vmatmul.mubr.msk.f32.gmra.mrb[28].mxu0 %vm81_vm0, %v74_v35 }
  0x53   :  { %1890 = vmatprep.mubr.msk.f32.mxu0 %vm81_vm0, %v75_v36 }
  0x56   :  { %1891 = vmatmul.mubr.msk.f32.gmra.mrb[30].mxu0 %vm81_vm0, %v76_v37 }
  0xed   :  { %v2278_v50 = vpop.f32.mrb[0].mxu0 }
  0xee   :  { %v405_v51 = vsel %vm403_vm1, %v2278_v50, 0.0  ;;  %v475_v52 = vmul.f32 %v2278_v50, %v2278_v50  ;;  %v2284_v53 = vpop.f32.mrb[1].mxu0 }
  0xef   :  { %v404_v54 = vsel %vm403_vm1, %v2284_v53, 0.0  ;;  %v474_v55 = vmul.f32 %v2284_v53, %v2284_v53 }
  0xf0   :  { %v507_v56 = vsel %vm403_vm1, %v475_v52, 0.0  ;;  %v406_v57 = vadd.f32 %v405_v51, %v404_v54 }
  0xf1   :  { %v506_v58 = vsel %vm403_vm1, %v474_v55, 0.0  ;;  %v2292_v59 = vpop.f32.mrb[2].mxu0 }
  0xf2   :  { %v508_v60 = vadd.f32 %v507_v56, %v506_v58  ;;  %v2294_v61 = vpop.f32.mrb[3].mxu0  ;;  %v477_v62 = vmul.f32 %v2292_v59, %v2292_v59  ;;  %v409_v2 = vsel %vm403_vm1, %v2292_v59, 0.0 }
  0xf3   :  { %v407_v63 = vsel %vm403_vm1, %v2294_v61, 0.0  ;;  %v476_v0 = vmul.f32 %v2294_v61, %v2294_v61 }
  0xf4   :  { %v408_v1 = vadd.f32 %v407_v63, %v406_v57  ;;  %v511_v8 = vsel %vm403_vm1, %v477_v62, 0.0 }
  0xf5   :  { %v509_v3 = vsel %vm403_vm1, %v476_v0, 0.0  ;;  %v2305_v4 = vpop.f32.mrb[4].mxu0 }
  0xf6   :  { %v510_v5 = vadd.f32 %v509_v3, %v508_v60  ;;  %v2307_v6 = vpop.f32.mrb[5].mxu0  ;;  %v410_v7 = vadd.f32 %v409_v2, %v408_v1  ;;  %v479_v9 = vmul.f32 %v2305_v4, %v2305_v4  ;;  %v413_v14 = vsel %vm403_vm1, %v2305_v4, 0.0 }
  0xf7   :  { %v411_v10 = vsel %vm403_vm1, %v2307_v6, 0.0  ;;  %v478_v11 = vmul.f32 %v2307_v6, %v2307_v6 }
  0xf8   :  { %v412_v12 = vadd.f32 %v411_v10, %v410_v7  ;;  %v512_v13 = vadd.f32 %v511_v8, %v510_v5  ;;  %v515_v20 = vsel %vm403_vm1, %v479_v9, 0.0 }
  0xf9   :  { %v513_v15 = vsel %vm403_vm1, %v478_v11, 0.0  ;;  %v2319_v16 = vpop.f32.mrb[6].mxu0 }
  0xfa   :  { %v514_v17 = vadd.f32 %v513_v15, %v512_v13  ;;  %v2321_v18 = vpop.f32.mrb[7].mxu0  ;;  %v414_v19 = vadd.f32 %v413_v14, %v412_v12  ;;  %v481_v21 = vmul.f32 %v2319_v16, %v2319_v16  ;;  %v417_v26 = vsel %vm403_vm1, %v2319_v16, 0.0 }
  0xfb   :  { %v415_v22 = vsel %vm403_vm1, %v2321_v18, 0.0  ;;  %v480_v23 = vmul.f32 %v2321_v18, %v2321_v18 }
  0xfc   :  { %v416_v24 = vadd.f32 %v415_v22, %v414_v19  ;;  %v516_v25 = vadd.f32 %v515_v20, %v514_v17  ;;  %v519_v32 = vsel %vm403_vm1, %v481_v21, 0.0 }
  0xfd   :  { %v517_v27 = vsel %vm403_vm1, %v480_v23, 0.0  ;;  %v2333_v28 = vpop.f32.mrb[8].mxu0 }
  0xfe   :  { %v518_v29 = vadd.f32 %v517_v27, %v516_v25  ;;  %v2335_v30 = vpop.f32.mrb[9].mxu0  ;;  %v418_v31 = vadd.f32 %v417_v26, %v416_v24  ;;  %v483_v33 = vmul.f32 %v2333_v28, %v2333_v28  ;;  %v421_v38 = vsel %vm403_vm1, %v2333_v28, 0.0 }
  0xff   :  { %v419_v34 = vsel %vm403_vm1, %v2335_v30, 0.0  ;;  %v482_v35 = vmul.f32 %v2335_v30, %v2335_v30 }
 0x100   :  { %v420_v36 = vadd.f32 %v419_v34, %v418_v31  ;;  %v520_v37 = vadd.f32 %v519_v32, %v518_v29  ;;  %v523_v44 = vsel %vm403_vm1, %v483_v33, 0.0 }
 0x101   :  { %v521_v39 = vsel %vm403_vm1, %v482_v35, 0.0  ;;  %v2347_v40 = vpop.f32.mrb[10].mxu0 }
 0x102   :  { %v522_v41 = vadd.f32 %v521_v39, %v520_v37  ;;  %v2349_v42 = vpop.f32.mrb[11].mxu0  ;;  %v422_v43 = vadd.f32 %v421_v38, %v420_v36  ;;  %v485_v45 = vmul.f32 %v2347_v40, %v2347_v40  ;;  %v425_v51 = vsel %vm403_vm1, %v2347_v40, 0.0 }
 0x103   :  { %v423_v46 = vsel %vm403_vm1, %v2349_v42, 0.0  ;;  %v484_v47 = vmul.f32 %v2349_v42, %v2349_v42 }
 0x104   :  { %v424_v48 = vadd.f32 %v423_v46, %v422_v43  ;;  %v524_v49 = vadd.f32 %v523_v44, %v522_v41  ;;  %v527_v58 = vsel %vm403_vm1, %v485_v45, 0.0 }
 0x105   :  { %v525_v52 = vsel %vm403_vm1, %v484_v47, 0.0  ;;  %v2361_v54 = vpop.f32.mrb[12].mxu0 }
 0x106   :  { %v526_v55 = vadd.f32 %v525_v52, %v524_v49  ;;  %v2363_v56 = vpop.f32.mrb[13].mxu0  ;;  %v426_v57 = vadd.f32 %v425_v51, %v424_v48  ;;  %v487_v60 = vmul.f32 %v2361_v54, %v2361_v54  ;;  %v429_v2 = vsel %vm403_vm1, %v2361_v54, 0.0 }
 0x107   :  { %v427_v62 = vsel %vm403_vm1, %v2363_v56, 0.0  ;;  %v486_v63 = vmul.f32 %v2363_v56, %v2363_v56 }
 0x108   :  { %v428_v0 = vadd.f32 %v427_v62, %v426_v57  ;;  %v528_v1 = vadd.f32 %v527_v58, %v526_v55  ;;  %v531_v10 = vsel %vm403_vm1, %v487_v60, 0.0 }
 0x109   :  { %v529_v3 = vsel %vm403_vm1, %v486_v63, 0.0  ;;  %v2375_v5 = vpop.f32.mrb[14].mxu0 }
 0x10a   :  { %v530_v7 = vadd.f32 %v529_v3, %v528_v1  ;;  %v2377_v8 = vpop.f32.mrb[15].mxu0  ;;  %v430_v9 = vadd.f32 %v429_v2, %v428_v0  ;;  %v489_v11 = vmul.f32 %v2375_v5, %v2375_v5  ;;  %v433_v17 = vsel %vm403_vm1, %v2375_v5, 0.0 }
 0x10b   :  { %v431_v12 = vsel %vm403_vm1, %v2377_v8, 0.0  ;;  %v488_v13 = vmul.f32 %v2377_v8, %v2377_v8 }
 0x10c   :  { %v432_v14 = vadd.f32 %v431_v12, %v430_v9  ;;  %v532_v15 = vadd.f32 %v531_v10, %v530_v7  ;;  %v535_v24 = vsel %vm403_vm1, %v489_v11, 0.0 }
 0x10d   :  { %v533_v19 = vsel %vm403_vm1, %v488_v13, 0.0  ;;  %v2389_v20 = vpop.f32.mrb[16].mxu0 }
 0x10e   :  { %v534_v21 = vadd.f32 %v533_v19, %v532_v15  ;;  %v2391_v22 = vpop.f32.mrb[17].mxu0  ;;  %v434_v23 = vadd.f32 %v433_v17, %v432_v14  ;;  %v491_v25 = vmul.f32 %v2389_v20, %v2389_v20  ;;  %v437_v32 = vsel %vm403_vm1, %v2389_v20, 0.0 }
 0x10f   :  { %v435_v26 = vsel %vm403_vm1, %v2391_v22, 0.0  ;;  %v490_v27 = vmul.f32 %v2391_v22, %v2391_v22 }
 0x110   :  { %v436_v29 = vadd.f32 %v435_v26, %v434_v23  ;;  %v536_v31 = vadd.f32 %v535_v24, %v534_v21  ;;  %v539_v38 = vsel %vm403_vm1, %v491_v25, 0.0 }
 0x111   :  { %v537_v33 = vsel %vm403_vm1, %v490_v27, 0.0  ;;  %v2403_v34 = vpop.f32.mrb[18].mxu0 }
 0x112   :  { %v538_v35 = vadd.f32 %v537_v33, %v536_v31  ;;  %v2405_v36 = vpop.f32.mrb[19].mxu0  ;;  %v438_v37 = vadd.f32 %v437_v32, %v436_v29  ;;  %v493_v39 = vmul.f32 %v2403_v34, %v2403_v34  ;;  %v441_v46 = vsel %vm403_vm1, %v2403_v34, 0.0 }
 0x113   :  { %v439_v41 = vsel %vm403_vm1, %v2405_v36, 0.0  ;;  %v492_v43 = vmul.f32 %v2405_v36, %v2405_v36 }
 0x114   :  { %v440_v44 = vadd.f32 %v439_v41, %v438_v37  ;;  %v540_v45 = vadd.f32 %v539_v38, %v538_v35  ;;  %v543_v55 = vsel %vm403_vm1, %v493_v39, 0.0 }
 0x115   :  { %v541_v47 = vsel %vm403_vm1, %v492_v43, 0.0  ;;  %v2417_v48 = vpop.f32.mrb[20].mxu0 }
 0x116   :  { %v542_v49 = vadd.f32 %v541_v47, %v540_v45  ;;  %v2419_v51 = vpop.f32.mrb[21].mxu0  ;;  %v442_v52 = vadd.f32 %v441_v46, %v440_v44  ;;  %v495_v57 = vmul.f32 %v2417_v48, %v2417_v48  ;;  %v445_v0 = vsel %vm403_vm1, %v2417_v48, 0.0 }
 0x117   :  { %v443_v58 = vsel %vm403_vm1, %v2419_v51, 0.0  ;;  %v494_v60 = vmul.f32 %v2419_v51, %v2419_v51 }
 0x118   :  { %v444_v62 = vadd.f32 %v443_v58, %v442_v52  ;;  %v544_v63 = vadd.f32 %v543_v55, %v542_v49  ;;  %v547_v10 = vsel %vm403_vm1, %v495_v57, 0.0 }
 0x119   :  { %v545_v1 = vsel %vm403_vm1, %v494_v60, 0.0  ;;  %v2431_v2 = vpop.f32.mrb[22].mxu0 }
 0x11a   :  { %v546_v3 = vadd.f32 %v545_v1, %v544_v63  ;;  %v2433_v7 = vpop.f32.mrb[23].mxu0  ;;  %v446_v9 = vadd.f32 %v445_v0, %v444_v62  ;;  %v497_v11 = vmul.f32 %v2431_v2, %v2431_v2  ;;  %v449_v17 = vsel %vm403_vm1, %v2431_v2, 0.0 }
 0x11b   :  { %v447_v12 = vsel %vm403_vm1, %v2433_v7, 0.0  ;;  %v496_v13 = vmul.f32 %v2433_v7, %v2433_v7 }
 0x11c   :  { %v448_v14 = vadd.f32 %v447_v12, %v446_v9  ;;  %v548_v15 = vadd.f32 %v547_v10, %v546_v3  ;;  %v551_v26 = vsel %vm403_vm1, %v497_v11, 0.0 }
 0x11d   :  { %v549_v19 = vsel %vm403_vm1, %v496_v13, 0.0  ;;  %v1883_v21 = vpop.f32.mrb[24].mxu0 }
 0x11e   :  { %v550_v23 = vadd.f32 %v549_v19, %v548_v15  ;;  %v2445_v24 = vpop.f32.mrb[25].mxu0  ;;  %v450_v25 = vadd.f32 %v449_v17, %v448_v14  ;;  %v499_v27 = vmul.f32 %v1883_v21, %v1883_v21  ;;  %v453_v35 = vsel %vm403_vm1, %v1883_v21, 0.0 }
 0x11f   :  { %v451_v29 = vsel %vm403_vm1, %v2445_v24, 0.0  ;;  %v498_v31 = vmul.f32 %v2445_v24, %v2445_v24 }
 0x120   :  { %v452_v32 = vadd.f32 %v451_v29, %v450_v25  ;;  %v552_v33 = vadd.f32 %v551_v26, %v550_v23  ;;  %v555_v44 = vsel %vm403_vm1, %v499_v27, 0.0 }
 0x121   :  { %v553_v37 = vsel %vm403_vm1, %v498_v31, 0.0  ;;  %v1886_v38 = vpop.f32.mrb[26].mxu0 }
 0x122   :  { %v554_v39 = vadd.f32 %v553_v37, %v552_v33  ;;  %v374_v41 = vpop.f32.mrb[27].mxu0  ;;  %v454_v43 = vadd.f32 %v453_v35, %v452_v32  ;;  %v501_v45 = vmul.f32 %v1886_v38, %v1886_v38  ;;  %v457_v55 = vsel %vm403_vm1, %v1886_v38, 0.0 }
 0x123   :  { %v455_v46 = vsel %vm403_vm1, %v374_v41, 0.0  ;;  %v500_v47 = vmul.f32 %v374_v41, %v374_v41 }
 0x124   :  { %v456_v49 = vadd.f32 %v455_v46, %v454_v43  ;;  %v556_v52 = vadd.f32 %v555_v44, %v554_v39  ;;  %v559_v0 = vsel %vm403_vm1, %v501_v45, 0.0 }
 0x125   :  { %v557_v57 = vsel %vm403_vm1, %v500_v47, 0.0  ;;  %v1889_v58 = vpop.f32.mrb[28].mxu0 }
 0x126   :  { %v558_v60 = vadd.f32 %v557_v57, %v556_v52  ;;  %v384_v62 = vpop.f32.mrb[29].mxu0  ;;  %v458_v63 = vadd.f32 %v457_v55, %v456_v49  ;;  %v503_v1 = vmul.f32 %v1889_v58, %v1889_v58  ;;  %v461_v12 = vsel %vm403_vm1, %v1889_v58, 0.0 }
 0x127   :  { %v459_v3 = vsel %vm403_vm1, %v384_v62, 0.0  ;;  %v502_v9 = vmul.f32 %v384_v62, %v384_v62 }
 0x128   :  { %v460_v10 = vadd.f32 %v459_v3, %v458_v63  ;;  %v560_v11 = vadd.f32 %v559_v0, %v558_v60  ;;  %v563_v21 = vsel %vm403_vm1, %v503_v1, 0.0 }
 0x129   :  { %v561_v13 = vsel %vm403_vm1, %v502_v9, 0.0  ;;  %v1892_v14 = vpop.f32.mrb[30].mxu0  ;;  %v587_v9 = vlaneseq }
 0x12a   :  { %v562_v15 = vadd.f32 %v561_v13, %v560_v11  ;;  %v394_v17 = vpop.f32.mrb[31].mxu0  ;;  %v462_v19 = vadd.f32 %v461_v12, %v460_v10  ;;  %v505_v23 = vmul.f32 %v1892_v14, %v1892_v14  ;;  %v465_v31 = vsel %vm403_vm1, %v1892_v14, 0.0  ;;  %v579_v11 = vld [vmem:[%s2870_s2] sm:$0x1] }
 0x12b   :  { %v463_v25 = vsel %vm403_vm1, %v394_v17, 0.0  ;;  %v504_v26 = vmul.f32 %v394_v17, %v394_v17  ;;  %v2468_v10 = vshrl.u32 %v587_v9, 7  ;;  %vm1625_vm3 = vcmp.lt.s32.totalorder %v587_v9, 256 }
 0x12c   :  { %v464_v27 = vadd.f32 %v463_v25, %v462_v19  ;;  %v564_v29 = vadd.f32 %v563_v21, %v562_v15  ;;  %v567_v37 = vsel %vm403_vm1, %v505_v23, 0.0  ;;  %v583_v15 = vld [vmem:[%s2871_s3] sm:$0x1] }
 0x12d   :  { %v565_v32 = vsel %vm403_vm1, %v504_v26, 0.0  ;;  %v2474_v12 = vsub.s32 0, %v2468_v10 }
 0x12e   :  { %v466_v33 = vadd.f32 %v465_v31, %v464_v27  ;;  %v566_v35 = vadd.f32 %v565_v32, %v564_v29 }
 0x130   :  { %v467_v38 = vrot.slane %v466_v33, 4  ;;  %v568_v39 = vadd.f32 %v567_v37, %v566_v35 }
 0x132   :  { %v468_v41 = vadd.f32 %v467_v38, %v466_v33  ;;  %v569_v43 = vrot.slane %v568_v39, 4 }
 0x134   :  { %v469_v44 = vrot.slane %v468_v41, 2  ;;  %v570_v45 = vadd.f32 %v569_v43, %v568_v39 }
 0x136   :  { %v470_v46 = vadd.f32 %v469_v44, %v468_v41  ;;  %v571_v47 = vrot.slane %v570_v45, 2 }
 0x138   :  { %v471_v49 = vrot.slane %v470_v46, 1  ;;  %v572_v52 = vadd.f32 %v571_v47, %v570_v45 }
 0x13a   :  { %v472_v55 = vadd.f32 %v471_v49, %v470_v46  ;;  %v573_v57 = vrot.slane %v572_v52, 1 }
 0x13c   :  { %v473_v58 = vmul.f32 0.005, %v472_v55  ;;  %v574_v60 = vadd.f32 %v573_v57, %v572_v52 }
 0x13e   :  { %v575_v62 = vmul.f32 0.005, %v574_v60  ;;  %v576_v63 = vmul.f32 %v473_v58, %v473_v58 }
 0x140   :  { %v577_v0 = vsub.f32 %v575_v62, %v576_v63 }
 0x142   :  { %v578_v1 = vmax.f32 %v577_v0, 0.0 }
 0x144   :  { %v580_v3 = vadd.f32 1e-05, %v578_v1 }
 0x146   :  { %2032 = vrsqrt.f32 %v580_v3 }
 0x150   :  { %v2033_v13 = vpop.eup %2032 }
 0x151   :  { %v582_v14 = vmul.f32 %v2033_v13, %v579_v11 }
 0x153   :  { %v584_v17 = vmul.f32 %v582_v14, %v473_v58  ;;  %v2480_v19 = vrot.slane %v582_v14, %v2474_v12 }
 0x155   :  { %v585_v21 = vsub.f32 %v583_v15, %v584_v17  ;;  %v592_v23 = vmul.f32 %v2480_v19, %v2284_v53  ;;  %v593_v25 = vmul.f32 %v2278_v50, %v2480_v19  ;;  %v594_v26 = vmul.f32 %v2480_v19, %v2294_v61 }
 0x156   :  { %v595_v27 = vmul.f32 %v2292_v59, %v2480_v19  ;;  %v596_v29 = vmul.f32 %v2480_v19, %v2307_v6  ;;  %v597_v31 = vmul.f32 %v2305_v4, %v2480_v19  ;;  %v598_v32 = vmul.f32 %v2480_v19, %v2321_v18 }
 0x157   :  { %v628_v53 = vrot.slane %v585_v21, %v2474_v12  ;;  %v599_v50 = vmul.f32 %v2319_v16, %v2480_v19  ;;  %v600_v61 = vmul.f32 %v2480_v19, %v2335_v30  ;;  %v601_v59 = vmul.f32 %v2333_v28, %v2480_v19 }
 0x158   :  { %v602_v6 = vmul.f32 %v2480_v19, %v2349_v42  ;;  %v603_v4 = vmul.f32 %v2347_v40, %v2480_v19  ;;  %v604_v18 = vmul.f32 %v2480_v19, %v2363_v56  ;;  %v605_v33 = vmul.f32 %v2361_v54, %v2480_v19 }
 0x159   :  { %v630_v35 = vadd.f32 %v628_v53, %v592_v23  ;;  %v631_v16 = vadd.f32 %v628_v53, %v593_v25  ;;  %v632_v37 = vadd.f32 %v628_v53, %v594_v26  ;;  %v633_v38 = vadd.f32 %v628_v53, %v595_v27 }
 0x15a   :  { %v634_v30 = vadd.f32 %v628_v53, %v596_v29  ;;  %v635_v39 = vadd.f32 %v628_v53, %v597_v31  ;;  %v636_v41 = vadd.f32 %v628_v53, %v598_v32  ;;  %v637_v28 = vadd.f32 %v628_v53, %v599_v50 }
 0x15b   :  { %v662_v43 = vmax.f32 %v630_v35, 0.0  ;;  %v663_v44 = vmax.f32 %v631_v16, 0.0  ;;  %v664_v42 = vmax.f32 %v632_v37, 0.0  ;;  %v638_v40 = vadd.f32 %v628_v53, %v600_v61 }
 0x15c   :  { %v639_v45 = vadd.f32 %v628_v53, %v601_v59  ;;  %v640_v46 = vadd.f32 %v628_v53, %v602_v6  ;;  %v641_v56 = vadd.f32 %v628_v53, %v603_v4  ;;  %v642_v54 = vadd.f32 %v628_v53, %v604_v18 }
 0x15d   :  { %1909 = vmatprep.mubr.msk.f32.mxu1 %vm403_vm1, %v662_v43  ;;  %v643_v47 = vadd.f32 %v628_v53, %v605_v33  ;;  %v606_v49 = vmul.f32 %v2480_v19, %v2377_v8  ;;  %v607_v52 = vmul.f32 %v2375_v5, %v2480_v19  ;;  %v665_v55 = vmax.f32 %v633_v38, 0.0 }
 0x15e   :  { %1910 = vmatmul.mubr.msk.f32.vlgmr.msra.gmra.mrb[0].mxu1 %vm403_vm1, %v663_v44  ;;  %v666_v57 = vmax.f32 %v634_v30, 0.0  ;;  %v608_v62 = vmul.f32 %v2480_v19, %v2391_v22  ;;  %v609_v63 = vmul.f32 %v2389_v20, %v2480_v19  ;;  %v610_v0 = vmul.f32 %v2480_v19, %v2405_v36 }
 0x15f   :  { %1912 = vmatprep.mubr.msk.f32.mxu1 %vm403_vm1, %v664_v42  ;;  %v644_v58 = vadd.f32 %v628_v53, %v606_v49  ;;  %v645_v60 = vadd.f32 %v628_v53, %v607_v52  ;;  %v611_v8 = vmul.f32 %v2403_v34, %v2480_v19  ;;  %v667_v5 = vmax.f32 %v635_v39, 0.0 }
 0x160   :  { %v612_v1 = vmul.f32 %v2480_v19, %v2419_v51  ;;  %v613_v3 = vmul.f32 %v2417_v48, %v2480_v19  ;;  %v646_v22 = vadd.f32 %v628_v53, %v608_v62  ;;  %v647_v11 = vadd.f32 %v628_v53, %v609_v63 }
 0x161   :  { %v648_v20 = vadd.f32 %v628_v53, %v610_v0  ;;  %v649_v13 = vadd.f32 %v628_v53, %v611_v8  ;;  %v614_v34 = vmul.f32 %v2480_v19, %v2433_v7  ;;  %v615_v15 = vmul.f32 %v2431_v2, %v2480_v19 }
 0x162   :  { %1913 = vmatmul.mubr.msk.f32.gmra.mrb[2].mxu1 %vm403_vm1, %v665_v55  ;;  %v650_v14 = vadd.f32 %v628_v53, %v612_v1  ;;  %v651_v36 = vadd.f32 %v628_v53, %v613_v3  ;;  %v668_v17 = vmax.f32 %v636_v41, 0.0  ;;  %v616_v48 = vmul.f32 %v2480_v19, %v2445_v24 }
 0x163   :  { %1915 = vmatprep.mubr.msk.f32.mxu1 %vm403_vm1, %v666_v57  ;;  %v652_v51 = vadd.f32 %v628_v53, %v614_v34  ;;  %v653_v21 = vadd.f32 %v628_v53, %v615_v15  ;;  %v669_v23 = vmax.f32 %v637_v28, 0.0  ;;  %v670_v25 = vmax.f32 %v638_v40, 0.0 }
 0x164   :  { %v654_v26 = vadd.f32 %v628_v53, %v616_v48  ;;  %v671_v7 = vmax.f32 %v639_v45, 0.0  ;;  %v672_v27 = vmax.f32 %v640_v46, 0.0  ;;  %v673_v2 = vmax.f32 %v641_v56, 0.0 }
 0x165   :  { %v674_v29 = vmax.f32 %v642_v54, 0.0  ;;  %v675_v24 = vmax.f32 %v643_v47, 0.0  ;;  %v676_v19 = vmax.f32 %v644_v58, 0.0  ;;  %v677_v31 = vmax.f32 %v645_v60, 0.0 }
 0x166   :  { %1916 = vmatmul.mubr.msk.f32.gmra.mrb[4].mxu1 %vm403_vm1, %v667_v5  ;;  %v678_v32 = vmax.f32 %v646_v22, 0.0  ;;  %v679_v53 = vmax.f32 %v647_v11, 0.0  ;;  %v680_v50 = vmax.f32 %v648_v20, 0.0  ;;  %v681_v61 = vmax.f32 %v649_v13, 0.0 }
 0x167   :  { %1918 = vmatprep.mubr.msk.f32.mxu1 %vm403_vm1, %v668_v17  ;;  %v682_v59 = vmax.f32 %v650_v14, 0.0  ;;  %v683_v6 = vmax.f32 %v651_v36, 0.0  ;;  %v684_v4 = vmax.f32 %v652_v51, 0.0  ;;  %v685_v18 = vmax.f32 %v653_v21, 0.0 }
 0x168   :  { %v686_v33 = vmax.f32 %v654_v26, 0.0  ;;  %v2059_v35 = vmov 0.0  }
 0x16a   :  { %1919 = vmatmul.mubr.msk.f32.gmra.mrb[6].mxu1 %vm403_vm1, %v669_v23 }
 0x16b   :  { %1921 = vmatprep.mubr.msk.f32.mxu1 %vm403_vm1, %v670_v25 }
 0x16e   :  { %1922 = vmatmul.mubr.msk.f32.gmra.mrb[8].mxu1 %vm403_vm1, %v671_v7 }
 0x16f   :  { %1924 = vmatprep.mubr.msk.f32.mxu1 %vm403_vm1, %v672_v27 }
 0x172   :  { %1925 = vmatmul.mubr.msk.f32.gmra.mrb[10].mxu1 %vm403_vm1, %v673_v2 }
 0x173   :  { %1927 = vmatprep.mubr.msk.f32.mxu1 %vm403_vm1, %v674_v29 }
 0x176   :  { %1928 = vmatmul.mubr.msk.f32.gmra.mrb[12].mxu1 %vm403_vm1, %v675_v24 }
 0x177   :  { %1930 = vmatprep.mubr.msk.f32.mxu1 %vm403_vm1, %v676_v19 }
 0x17a   :  { %1931 = vmatmul.mubr.msk.f32.gmra.mrb[14].mxu1 %vm403_vm1, %v677_v31 }
 0x17b   :  { %1933 = vmatprep.mubr.msk.f32.mxu1 %vm403_vm1, %v678_v32 }
 0x17e   :  { %1934 = vmatmul.mubr.msk.f32.gmra.mrb[16].mxu1 %vm403_vm1, %v679_v53 }
 0x17f   :  { %1936 = vmatprep.mubr.msk.f32.mxu1 %vm403_vm1, %v680_v50 }
 0x182   :  { %1937 = vmatmul.mubr.msk.f32.gmra.mrb[18].mxu1 %vm403_vm1, %v681_v61 }
 0x183   :  { %1939 = vmatprep.mubr.msk.f32.mxu1 %vm403_vm1, %v682_v59 }
 0x186   :  { %1940 = vmatmul.mubr.msk.f32.gmra.mrb[20].mxu1 %vm403_vm1, %v683_v6 }
 0x187   :  { %1942 = vmatprep.mubr.msk.f32.mxu1 %vm403_vm1, %v684_v4 }
 0x18a   :  { %1943 = vmatmul.mubr.msk.f32.gmra.mrb[22].mxu1 %vm403_vm1, %v685_v18 }
 0x18b   :  { %1945 = vmatprep.mubr.msk.f32.mxu1 %vm403_vm1, %v686_v33 }
 0x18e   :  { %1946 = vmatmul.mubr.f32.gmra.mrb[24].mxu1 %v2059_v35 }
 0x18f   :  { %1948 = vmatprep.mubr.f32.mxu1 %v2059_v35 }
 0x192   :  { %1949 = vmatmul.mubr.f32.gmra.mrb[26].mxu1 %v2059_v35 }
 0x193   :  { %1951 = vmatprep.mubr.f32.mxu1 %v2059_v35 }
 0x196   :  { %1952 = vmatmul.mubr.f32.gmra.mrb[28].mxu1 %v2059_v35 }
 0x197   :  { %1954 = vmatprep.mubr.f32.mxu1 %v2059_v35 }
 0x19a   :  { %1955 = vmatmul.mubr.f32.gmra.mrb[30].mxu1 %v2059_v35 }
 0x231   :  { %v2558_v16 = vpop.f32.mrb[0].mxu1 }
 0x232   :  { %v1121_v37 = vsel %vm403_vm1, %v2558_v16, 0.0  ;;  %v1191_v38 = vmul.f32 %v2558_v16, %v2558_v16  ;;  %v2564_v30 = vpop.f32.mrb[1].mxu1 }
 0x233   :  { %v1120_v39 = vsel %vm403_vm1, %v2564_v30, 0.0  ;;  %v1190_v41 = vmul.f32 %v2564_v30, %v2564_v30 }
 0x234   :  { %v1223_v28 = vsel %vm403_vm1, %v1191_v38, 0.0  ;;  %v1122_v43 = vadd.f32 %v1121_v37, %v1120_v39 }
 0x235   :  { %v1222_v44 = vsel %vm403_vm1, %v1190_v41, 0.0  ;;  %v2572_v42 = vpop.f32.mrb[2].mxu1 }
 0x236   :  { %v1224_v40 = vadd.f32 %v1223_v28, %v1222_v44  ;;  %v2574_v45 = vpop.f32.mrb[3].mxu1  ;;  %v1193_v46 = vmul.f32 %v2572_v42, %v2572_v42  ;;  %v1125_v49 = vsel %vm403_vm1, %v2572_v42, 0.0 }
 0x237   :  { %v1123_v56 = vsel %vm403_vm1, %v2574_v45, 0.0  ;;  %v1192_v54 = vmul.f32 %v2574_v45, %v2574_v45 }
 0x238   :  { %v1124_v47 = vadd.f32 %v1123_v56, %v1122_v43  ;;  %v1227_v62 = vsel %vm403_vm1, %v1193_v46, 0.0 }
 0x239   :  { %v1225_v52 = vsel %vm403_vm1, %v1192_v54, 0.0  ;;  %v2585_v55 = vpop.f32.mrb[4].mxu1 }
 0x23a   :  { %v1226_v57 = vadd.f32 %v1225_v52, %v1224_v40  ;;  %v2587_v58 = vpop.f32.mrb[5].mxu1  ;;  %v1126_v60 = vadd.f32 %v1125_v49, %v1124_v47  ;;  %v1195_v63 = vmul.f32 %v2585_v55, %v2585_v55  ;;  %v1129_v3 = vsel %vm403_vm1, %v2585_v55, 0.0 }
 0x23b   :  { %v1127_v0 = vsel %vm403_vm1, %v2587_v58, 0.0  ;;  %v1194_v8 = vmul.f32 %v2587_v58, %v2587_v58 }
 0x23c   :  { %v1128_v5 = vadd.f32 %v1127_v0, %v1126_v60  ;;  %v1228_v1 = vadd.f32 %v1227_v62, %v1226_v57  ;;  %v1231_v36 = vsel %vm403_vm1, %v1195_v63, 0.0 }
 0x23d   :  { %v1229_v22 = vsel %vm403_vm1, %v1194_v8, 0.0  ;;  %v2599_v11 = vpop.f32.mrb[6].mxu1 }
 0x23e   :  { %v1230_v20 = vadd.f32 %v1229_v22, %v1228_v1  ;;  %v2601_v13 = vpop.f32.mrb[7].mxu1  ;;  %v1130_v14 = vadd.f32 %v1129_v3, %v1128_v5  ;;  %v1197_v34 = vmul.f32 %v2599_v11, %v2599_v11  ;;  %v1133_v48 = vsel %vm403_vm1, %v2599_v11, 0.0 }
 0x23f   :  { %v1131_v15 = vsel %vm403_vm1, %v2601_v13, 0.0  ;;  %v1196_v17 = vmul.f32 %v2601_v13, %v2601_v13 }
 0x240   :  { %v1132_v51 = vadd.f32 %v1131_v15, %v1130_v14  ;;  %v1232_v21 = vadd.f32 %v1231_v36, %v1230_v20  ;;  %v1235_v2 = vsel %vm403_vm1, %v1197_v34, 0.0 }
 0x241   :  { %v1233_v23 = vsel %vm403_vm1, %v1196_v17, 0.0  ;;  %v2613_v25 = vpop.f32.mrb[8].mxu1 }
 0x242   :  { %v1234_v26 = vadd.f32 %v1233_v23, %v1232_v21  ;;  %v2615_v7 = vpop.f32.mrb[9].mxu1  ;;  %v1134_v27 = vadd.f32 %v1133_v48, %v1132_v51  ;;  %v1199_v29 = vmul.f32 %v2613_v25, %v2613_v25  ;;  %v1137_v53 = vsel %vm403_vm1, %v2613_v25, 0.0 }
 0x243   :  { %v1135_v24 = vsel %vm403_vm1, %v2615_v7, 0.0  ;;  %v1198_v19 = vmul.f32 %v2615_v7, %v2615_v7 }
 0x244   :  { %v1136_v31 = vadd.f32 %v1135_v24, %v1134_v27  ;;  %v1236_v32 = vadd.f32 %v1235_v2, %v1234_v26  ;;  %v1239_v18 = vsel %vm403_vm1, %v1199_v29, 0.0 }
 0x245   :  { %v1237_v50 = vsel %vm403_vm1, %v1198_v19, 0.0  ;;  %v2627_v61 = vpop.f32.mrb[10].mxu1 }
 0x246   :  { %v1238_v59 = vadd.f32 %v1237_v50, %v1236_v32  ;;  %v2629_v6 = vpop.f32.mrb[11].mxu1  ;;  %v1138_v4 = vadd.f32 %v1137_v53, %v1136_v31  ;;  %v1201_v33 = vmul.f32 %v2627_v61, %v2627_v61  ;;  %v1141_v41 = vsel %vm403_vm1, %v2627_v61, 0.0 }
 0x247   :  { %v1139_v35 = vsel %vm403_vm1, %v2629_v6, 0.0  ;;  %v1200_v37 = vmul.f32 %v2629_v6, %v2629_v6 }
 0x248   :  { %v1140_v38 = vadd.f32 %v1139_v35, %v1138_v4  ;;  %v1240_v39 = vadd.f32 %v1239_v18, %v1238_v59  ;;  %v1243_v56 = vsel %vm403_vm1, %v1201_v33, 0.0 }
 0x249   :  { %v1241_v28 = vsel %vm403_vm1, %v1200_v37, 0.0  ;;  %v2641_v43 = vpop.f32.mrb[12].mxu1 }
 0x24a   :  { %v1242_v44 = vadd.f32 %v1241_v28, %v1240_v39  ;;  %v2643_v40 = vpop.f32.mrb[13].mxu1  ;;  %v1142_v46 = vadd.f32 %v1141_v41, %v1140_v38  ;;  %v1203_v54 = vmul.f32 %v2641_v43, %v2641_v43  ;;  %v1145_v60 = vsel %vm403_vm1, %v2641_v43, 0.0 }
 0x24b   :  { %v1143_v47 = vsel %vm403_vm1, %v2643_v40, 0.0  ;;  %v1202_v49 = vmul.f32 %v2643_v40, %v2643_v40 }
 0x24c   :  { %v1144_v52 = vadd.f32 %v1143_v47, %v1142_v46  ;;  %v1244_v57 = vadd.f32 %v1243_v56, %v1242_v44  ;;  %v1247_v1 = vsel %vm403_vm1, %v1203_v54, 0.0 }
 0x24d   :  { %v1245_v62 = vsel %vm403_vm1, %v1202_v49, 0.0  ;;  %v2655_v63 = vpop.f32.mrb[14].mxu1 }
 0x24e   :  { %v1246_v0 = vadd.f32 %v1245_v62, %v1244_v57  ;;  %v2657_v8 = vpop.f32.mrb[15].mxu1  ;;  %v1146_v5 = vadd.f32 %v1145_v60, %v1144_v52  ;;  %v1205_v3 = vmul.f32 %v2655_v63, %v2655_v63  ;;  %v1149_v34 = vsel %vm403_vm1, %v2655_v63, 0.0 }
 0x24f   :  { %v1147_v22 = vsel %vm403_vm1, %v2657_v8, 0.0  ;;  %v1204_v20 = vmul.f32 %v2657_v8, %v2657_v8 }
 0x250   :  { %v1148_v14 = vadd.f32 %v1147_v22, %v1146_v5  ;;  %v1248_v36 = vadd.f32 %v1247_v1, %v1246_v0  ;;  %v1251_v23 = vsel %vm403_vm1, %v1205_v3, 0.0 }
 0x251   :  { %v1249_v15 = vsel %vm403_vm1, %v1204_v20, 0.0  ;;  %v2669_v17 = vpop.f32.mrb[16].mxu1 }
 0x252   :  { %v1250_v51 = vadd.f32 %v1249_v15, %v1248_v36  ;;  %v2671_v21 = vpop.f32.mrb[17].mxu1  ;;  %v1150_v48 = vadd.f32 %v1149_v34, %v1148_v14  ;;  %v1207_v26 = vmul.f32 %v2669_v17, %v2669_v17  ;;  %v1153_v19 = vsel %vm403_vm1, %v2669_v17, 0.0 }
 0x253   :  { %v1151_v27 = vsel %vm403_vm1, %v2671_v21, 0.0  ;;  %v1206_v2 = vmul.f32 %v2671_v21, %v2671_v21 }
 0x254   :  { %v1152_v29 = vadd.f32 %v1151_v27, %v1150_v48  ;;  %v1252_v24 = vadd.f32 %v1251_v23, %v1250_v51  ;;  %v1255_v4 = vsel %vm403_vm1, %v1207_v26, 0.0 }
 0x255   :  { %v1253_v31 = vsel %vm403_vm1, %v1206_v2, 0.0  ;;  %v2683_v32 = vpop.f32.mrb[18].mxu1 }
 0x256   :  { %v1254_v53 = vadd.f32 %v1253_v31, %v1252_v24  ;;  %v2685_v50 = vpop.f32.mrb[19].mxu1  ;;  %v1154_v59 = vadd.f32 %v1153_v19, %v1152_v29  ;;  %v1209_v18 = vmul.f32 %v2683_v32, %v2683_v32  ;;  %v1157_v39 = vsel %vm403_vm1, %v2683_v32, 0.0 }
 0x257   :  { %v1155_v33 = vsel %vm403_vm1, %v2685_v50, 0.0  ;;  %v1208_v35 = vmul.f32 %v2685_v50, %v2685_v50 }
 0x258   :  { %v1156_v37 = vadd.f32 %v1155_v33, %v1154_v59  ;;  %v1256_v38 = vadd.f32 %v1255_v4, %v1254_v53  ;;  %v1259_v54 = vsel %vm403_vm1, %v1209_v18, 0.0 }
 0x259   :  { %v1257_v41 = vsel %vm403_vm1, %v1208_v35, 0.0  ;;  %v2697_v28 = vpop.f32.mrb[20].mxu1 }
 0x25a   :  { %v1258_v44 = vadd.f32 %v1257_v41, %v1256_v38  ;;  %v2699_v46 = vpop.f32.mrb[21].mxu1  ;;  %v1158_v56 = vadd.f32 %v1157_v39, %v1156_v37  ;;  %v1211_v47 = vmul.f32 %v2697_v28, %v2697_v28  ;;  %v1161_v62 = vsel %vm403_vm1, %v2697_v28, 0.0 }
 0x25b   :  { %v1159_v49 = vsel %vm403_vm1, %v2699_v46, 0.0  ;;  %v1210_v52 = vmul.f32 %v2699_v46, %v2699_v46 }
 0x25c   :  { %v1160_v57 = vadd.f32 %v1159_v49, %v1158_v56  ;;  %v1260_v60 = vadd.f32 %v1259_v54, %v1258_v44  ;;  %v1263_v20 = vsel %vm403_vm1, %v1211_v47, 0.0 }
 0x25d   :  { %v1261_v0 = vsel %vm403_vm1, %v1210_v52, 0.0  ;;  %v2711_v5 = vpop.f32.mrb[22].mxu1 }
 0x25e   :  { %v1262_v1 = vadd.f32 %v1261_v0, %v1260_v60  ;;  %v2713_v3 = vpop.f32.mrb[23].mxu1  ;;  %v1162_v22 = vadd.f32 %v1161_v62, %v1160_v57  ;;  %v1213_v14 = vmul.f32 %v2711_v5, %v2711_v5  ;;  %v1165_v48 = vsel %vm403_vm1, %v2711_v5, 0.0 }
 0x25f   :  { %v1163_v36 = vsel %vm403_vm1, %v2713_v3, 0.0  ;;  %v1212_v34 = vmul.f32 %v2713_v3, %v2713_v3 }
 0x260   :  { %v1164_v15 = vadd.f32 %v1163_v36, %v1162_v22  ;;  %v1264_v51 = vadd.f32 %v1263_v20, %v1262_v1  ;;  %v1267_v24 = vsel %vm403_vm1, %v1213_v14, 0.0 }
 0x261   :  { %v1265_v23 = vsel %vm403_vm1, %v1212_v34, 0.0  ;;  %v2725_v26 = vpop.f32.mrb[24].mxu1 }
 0x262   :  { %v1266_v27 = vadd.f32 %v1265_v23, %v1264_v51  ;;  %v2727_v2 = vpop.f32.mrb[25].mxu1  ;;  %v1166_v29 = vadd.f32 %v1165_v48, %v1164_v15  ;;  %v1215_v19 = vmul.f32 %v2725_v26, %v2725_v26  ;;  %v1169_v18 = vsel %vm403_vm1, %v2725_v26, 0.0  ;;  %v2767_v51 = vld [vmem:[%s2875_s7] sm:$0xff] }
 0x263   :  { %v1167_v31 = vsel %vm403_vm1, %v2727_v2, 0.0  ;;  %v1214_v53 = vmul.f32 %v2727_v2, %v2727_v2  ;;  %1835 = vmatprep.mubr.msk.f32.mxu0 %vm403_vm1, %v2767_v51 }
 0x264   :  { %v1168_v59 = vadd.f32 %v1167_v31, %v1166_v29  ;;  %v1268_v4 = vadd.f32 %v1267_v24, %v1266_v27  ;;  %v1271_v41 = vsel %vm403_vm1, %v1215_v19, 0.0 }
 0x265   :  { %v1269_v33 = vsel %vm403_vm1, %v1214_v53, 0.0  ;;  %v2739_v35 = vpop.f32.mrb[26].mxu1 }
 0x266   :  { %v1270_v37 = vadd.f32 %v1269_v33, %v1268_v4  ;;  %v2741_v38 = vpop.f32.mrb[27].mxu1  ;;  %v1170_v39 = vadd.f32 %v1169_v18, %v1168_v59  ;;  %v1217_v44 = vmul.f32 %v2739_v35, %v2739_v35  ;;  %v1173_v52 = vsel %vm403_vm1, %v2739_v35, 0.0 }
 0x267   :  { %v1171_v56 = vsel %vm403_vm1, %v2741_v38, 0.0  ;;  %v1216_v54 = vmul.f32 %v2741_v38, %v2741_v38 }
 0x268   :  { %v1172_v47 = vadd.f32 %v1171_v56, %v1170_v39  ;;  %v1272_v49 = vadd.f32 %v1271_v41, %v1270_v37  ;;  %v1275_v22 = vsel %vm403_vm1, %v1217_v44, 0.0 }
 0x269   :  { %v1273_v57 = vsel %vm403_vm1, %v1216_v54, 0.0  ;;  %v2753_v60 = vpop.f32.mrb[28].mxu1 }
 0x26a   :  { %v1274_v62 = vadd.f32 %v1273_v57, %v1272_v49  ;;  %v2755_v0 = vpop.f32.mrb[29].mxu1  ;;  %v1174_v1 = vadd.f32 %v1173_v52, %v1172_v47  ;;  %v1219_v20 = vmul.f32 %v2753_v60, %v2753_v60  ;;  %v1177_v48 = vsel %vm403_vm1, %v2753_v60, 0.0 }
 0x26b   :  { %v1175_v14 = vsel %vm403_vm1, %v2755_v0, 0.0  ;;  %v1218_v36 = vmul.f32 %v2755_v0, %v2755_v0 }
 0x26c   :  { %v1176_v34 = vadd.f32 %v1175_v14, %v1174_v1  ;;  %v1276_v15 = vadd.f32 %v1275_v22, %v1274_v62  ;;  %v1279_v31 = vsel %vm403_vm1, %v1219_v20, 0.0 }
 0x26d   :  { %v1277_v23 = vsel %vm403_vm1, %v1218_v36, 0.0  ;;  %v1956_v27 = vpop.f32.mrb[30].mxu1 }
 0x26e   :  { %v1278_v29 = vadd.f32 %v1277_v23, %v1276_v15  ;;  %v1111_v24 = vpop.f32.mrb[31].mxu1  ;;  %v1178_v19 = vadd.f32 %v1177_v48, %v1176_v34  ;;  %v1221_v53 = vmul.f32 %v1956_v27, %v1956_v27  ;;  %v1181_v37 = vsel %vm403_vm1, %v1956_v27, 0.0 }
 0x26f   :  { %v1179_v59 = vsel %vm403_vm1, %v1111_v24, 0.0  ;;  %v1220_v4 = vmul.f32 %v1111_v24, %v1111_v24 }
 0x270   :  { %v1180_v18 = vadd.f32 %v1179_v59, %v1178_v19  ;;  %v1280_v33 = vadd.f32 %v1279_v31, %v1278_v29  ;;  %v1283_v56 = vsel %vm403_vm1, %v1221_v53, 0.0  ;;  %v1295_v53 = vld [vmem:[%s2873_s5] sm:$0x1]  ;;  %s1581_s5 = sld [smem:[#allocation2]] }
 0x271   :  { %v1281_v39 = vsel %vm403_vm1, %v1220_v4, 0.0 }
 0x272   :  { %v1182_v41 = vadd.f32 %v1181_v37, %v1180_v18  ;;  %v1282_v44 = vadd.f32 %v1281_v39, %v1280_v33  ;;  %v1299_v33 = vld [vmem:[%s2874_s6] sm:$0x1]  ;;  %s1723_s6 = sld [smem:[#allocation2 + $0x1]] }
 0x274   :  { %v1183_v54 = vrot.slane %v1182_v41, 4  ;;  %v1284_v47 = vadd.f32 %v1283_v56, %v1282_v44 }
 0x276   :  { %v1184_v49 = vadd.f32 %v1183_v54, %v1182_v41  ;;  %v1285_v52 = vrot.slane %v1284_v47, 4 }
 0x278   :  { %v1185_v57 = vrot.slane %v1184_v49, 2  ;;  %v1286_v62 = vadd.f32 %v1285_v52, %v1284_v47 }
 0x27a   :  { %v1186_v1 = vadd.f32 %v1185_v57, %v1184_v49  ;;  %v1287_v22 = vrot.slane %v1286_v62, 2 }
 0x27c   :  { %v1187_v20 = vrot.slane %v1186_v1, 1  ;;  %v1288_v14 = vadd.f32 %v1287_v22, %v1286_v62 }
 0x27e   :  { %v1188_v36 = vadd.f32 %v1187_v20, %v1186_v1  ;;  %v1289_v34 = vrot.slane %v1288_v14, 1 }
 0x280   :  { %v1189_v15 = vmul.f32 0.005, %v1188_v36  ;;  %v1290_v48 = vadd.f32 %v1289_v34, %v1288_v14 }
 0x282   :  { %v1291_v23 = vmul.f32 0.005, %v1290_v48  ;;  %v1292_v29 = vmul.f32 %v1189_v15, %v1189_v15 }
 0x284   :  { %v1293_v19 = vsub.f32 %v1291_v23, %v1292_v29 }
 0x286   :  { %v1294_v31 = vmax.f32 %v1293_v19, 0.0 }
 0x288   :  { %v1296_v59 = vadd.f32 1e-05, %v1294_v31 }
 0x28a   :  { %2034 = vrsqrt.f32 %v1296_v59 }
 0x294   :  { %v2035_v4 = vpop.eup %2034 }
 0x295   :  { %v1298_v18 = vmul.f32 %v2035_v4, %v1295_v53 }
 0x297   :  { %v1300_v37 = vmul.f32 %v1298_v18, %v1189_v15  ;;  %v1306_v39 = vrot.slane %v1298_v18, %v2474_v12 }
 0x299   :  { %v1301_v41 = vsub.f32 %v1299_v33, %v1300_v37  ;;  %v1338_v44 = vmul.f32 %v1306_v39, %v1111_v24  ;;  %v1339_v56 = vmul.f32 %v1956_v27, %v1306_v39  ;;  %v1308_v54 = vmul.f32 %v1306_v39, %v2564_v30 }
 0x29a   :  { %v1309_v47 = vmul.f32 %v2558_v16, %v1306_v39  ;;  %v1310_v49 = vmul.f32 %v1306_v39, %v2574_v45  ;;  %v1311_v52 = vmul.f32 %v2572_v42, %v1306_v39  ;;  %v1312_v57 = vmul.f32 %v1306_v39, %v2587_v58 }
 0x29b   :  { %v1344_v62 = vrot.slane %v1301_v41, %v2474_v12  ;;  %v1313_v1 = vmul.f32 %v2585_v55, %v1306_v39  ;;  %v1314_v22 = vmul.f32 %v1306_v39, %v2601_v13  ;;  %v1315_v20 = vmul.f32 %v2599_v11, %v1306_v39 }
 0x29c   :  { %v1316_v27 = vmul.f32 %v1306_v39, %v2615_v7  ;;  %v1317_v30 = vmul.f32 %v2613_v25, %v1306_v39  ;;  %v1318_v16 = vmul.f32 %v1306_v39, %v2629_v6  ;;  %v1319_v45 = vmul.f32 %v2627_v61, %v1306_v39 }
 0x29d   :  { %v1376_v24 = vadd.f32 %v1344_v62, %v1338_v44  ;;  %v1377_v42 = vadd.f32 %v1344_v62, %v1339_v56  ;;  %v1320_v58 = vmul.f32 %v1306_v39, %v2643_v40  ;;  %v1321_v12 = vmul.f32 %v2641_v43, %v1306_v39 }
 0x29e   :  { %v1322_v55 = vmul.f32 %v1306_v39, %v2657_v8  ;;  %v1323_v13 = vmul.f32 %v2655_v63, %v1306_v39  ;;  %v1324_v11 = vmul.f32 %v1306_v39, %v2671_v21  ;;  %v1325_v7 = vmul.f32 %v2669_v17, %v1306_v39 }
 0x29f   :  { %v1408_v14 = vmax.f32 %v1376_v24, 0.0  ;;  %v1409_v25 = vmax.f32 %v1377_v42, 0.0  ;;  %v1326_v6 = vmul.f32 %v1306_v39, %v2685_v50  ;;  %v1327_v61 = vmul.f32 %v2683_v32, %v1306_v39 }
 0x2a0   :  { %v1328_v36 = vmul.f32 %v1306_v39, %v2699_v46  ;;  %v1329_v40 = vmul.f32 %v2697_v28, %v1306_v39  ;;  %v1330_v43 = vmul.f32 %v1306_v39, %v2713_v3  ;;  %v1331_v8 = vmul.f32 %v2711_v5, %v1306_v39 }
 0x2a1   :  { %v2811_v34 = vpack.c.bf16 %v1409_v25, %v1408_v14  ;;  %v1332_v63 = vmul.f32 %v1306_v39, %v2727_v2  ;;  %v1333_v17 = vmul.f32 %v2725_v26, %v1306_v39  ;;  %v1334_v21 = vmul.f32 %v1306_v39, %v2741_v38 }
 0x2a2   :  { %v1335_v50 = vmul.f32 %v2739_v35, %v1306_v39  ;;  %v1336_v32 = vmul.f32 %v1306_v39, %v2755_v0  ;;  %v1337_v46 = vmul.f32 %v2753_v60, %v1306_v39  ;;  %v2819_v15 = vadd.f32 %v1344_v62, %v1308_v54 }
 0x2a3   :  { %v1347_v28 = vadd.f32 %v1344_v62, %v1309_v47  ;;  %v1348_v3 = vadd.f32 %v1344_v62, %v1310_v49  ;;  %v1349_v48 = vadd.f32 %v1344_v62, %v1311_v52  ;;  %v1350_v5 = vadd.f32 %v1344_v62, %v1312_v57 }
 0x2a4   :  { %v1351_v23 = vadd.f32 %v1344_v62, %v1313_v1  ;;  %v1352_v29 = vadd.f32 %v1344_v62, %v1314_v22  ;;  %v1353_v19 = vadd.f32 %v1344_v62, %v1315_v20  ;;  %v1354_v2 = vadd.f32 %v1344_v62, %v1316_v27 }
 0x2a5   :  { %v1355_v31 = vadd.f32 %v1344_v62, %v1317_v30  ;;  %v1356_v26 = vadd.f32 %v1344_v62, %v1318_v16  ;;  %v1357_v59 = vadd.f32 %v1344_v62, %v1319_v45  ;;  %v1358_v38 = vadd.f32 %v1344_v62, %v1320_v58 }
 0x2a6   :  { %v1359_v53 = vadd.f32 %v1344_v62, %v1321_v12  ;;  %v1360_v35 = vadd.f32 %v1344_v62, %v1322_v55  ;;  %v1361_v4 = vadd.f32 %v1344_v62, %v1323_v13  ;;  %v1362_v0 = vadd.f32 %v1344_v62, %v1324_v11 }
 0x2a7   :  { %v1363_v18 = vadd.f32 %v1344_v62, %v1325_v7  ;;  %v1364_v60 = vadd.f32 %v1344_v62, %v1326_v6  ;;  %v1365_v33 = vadd.f32 %v1344_v62, %v1327_v61  ;;  %v1366_v37 = vadd.f32 %v1344_v62, %v1328_v36 }
 0x2a8   :  { %v1367_v39 = vadd.f32 %v1344_v62, %v1329_v40  ;;  %v1368_v41 = vadd.f32 %v1344_v62, %v1330_v43  ;;  %v1369_v44 = vadd.f32 %v1344_v62, %v1331_v8  ;;  %v1370_v56 = vadd.f32 %v1344_v62, %v1332_v63 }
 0x2a9   :  { %v1371_v54 = vadd.f32 %v1344_v62, %v1333_v17  ;;  %v1372_v47 = vadd.f32 %v1344_v62, %v1334_v21  ;;  %v1373_v49 = vadd.f32 %v1344_v62, %v1335_v50  ;;  %v1374_v52 = vadd.f32 %v1344_v62, %v1336_v32 }
 0x2aa   :  { %v1375_v57 = vadd.f32 %v1344_v62, %v1337_v46  ;;  %v1378_v1 = vmax.f32 %v2819_v15, 0.0  ;;  %v1379_v22 = vmax.f32 %v1347_v28, 0.0  ;;  %v1380_v20 = vmax.f32 %v1348_v3, 0.0 }
 0x2ab   :  { %v1381_v27 = vmax.f32 %v1349_v48, 0.0  ;;  %v1382_v30 = vmax.f32 %v1350_v5, 0.0  ;;  %v1383_v16 = vmax.f32 %v1351_v23, 0.0  ;;  %v1384_v45 = vmax.f32 %v1352_v29, 0.0 }
 0x2ac   :  { %v1385_v24 = vmax.f32 %v1353_v19, 0.0  ;;  %v1386_v42 = vmax.f32 %v1354_v2, 0.0  ;;  %v1387_v58 = vmax.f32 %v1355_v31, 0.0  ;;  %v1388_v12 = vmax.f32 %v1356_v26, 0.0 }
 0x2ad   :  { %v1389_v55 = vmax.f32 %v1357_v59, 0.0  ;;  %v1390_v13 = vmax.f32 %v1358_v38, 0.0  ;;  %v1391_v11 = vmax.f32 %v1359_v53, 0.0  ;;  %v1392_v7 = vmax.f32 %v1360_v35, 0.0 }
 0x2ae   :  { %v1393_v14 = vmax.f32 %v1361_v4, 0.0  ;;  %v1394_v25 = vmax.f32 %v1362_v0, 0.0  ;;  %v1395_v6 = vmax.f32 %v1363_v18, 0.0  ;;  %v1396_v62 = vmax.f32 %v1364_v60, 0.0 }
 0x2af   :  { %v1397_v61 = vmax.f32 %v1365_v33, 0.0  ;;  %v1398_v36 = vmax.f32 %v1366_v37, 0.0  ;;  %v1399_v40 = vmax.f32 %v1367_v39, 0.0  ;;  %v1400_v43 = vmax.f32 %v1368_v41, 0.0 }
 0x2b0   :  { %v1401_v8 = vmax.f32 %v1369_v44, 0.0  ;;  %v1402_v63 = vmax.f32 %v1370_v56, 0.0  ;;  %v1403_v17 = vmax.f32 %v1371_v54, 0.0  ;;  %v1404_v21 = vmax.f32 %v1372_v47, 0.0 }
 0x2b1   :  { %v1405_v32 = vmax.f32 %v1373_v49, 0.0  ;;  %v1406_v46 = vmax.f32 %v1374_v52, 0.0  ;;  %v1407_v15 = vmax.f32 %v1375_v57, 0.0  ;;  %v1981_v28 = vpack.c.bf16 %v1395_v6, %v1394_v25 }
 0x2b2   :  { %v1984_v3 = vpack.c.bf16 %v1379_v22, %v1378_v1  ;;  %v1990_v48 = vpack.c.bf16 %v1381_v27, %v1380_v20  ;;  %v1996_v5 = vpack.c.bf16 %v1383_v16, %v1382_v30  ;;  %v2002_v23 = vpack.c.bf16 %v1385_v24, %v1384_v45 }
 0x2b3   :  { %1983 = vmatprep.subr.msk.bf16.mxu0 %vm2824_vm2, %v1981_v28  ;;  %v2008_v29 = vpack.c.bf16 %v1387_v58, %v1386_v42  ;;  %v2014_v19 = vpack.c.bf16 %v1389_v55, %v1388_v12  ;;  %v2020_v2 = vpack.c.bf16 %v1391_v11, %v1390_v13  ;;  %v2026_v31 = vpack.c.bf16 %v1393_v14, %v1392_v7 }
 0x2b4   :  { %1986 = vmatpush3.bf16.xpose.msk.msra.mxu0 %vm2824_vm2, %v1984_v3  ;;  %v1987_v26 = vpack.c.bf16 %v1397_v61, %v1396_v62  ;;  %v1993_v59 = vpack.c.bf16 %v1399_v40, %v1398_v36  ;;  %v1999_v38 = vpack.c.bf16 %v1401_v8, %v1400_v43  ;;  %v2005_v53 = vpack.c.bf16 %v1403_v17, %v1402_v63 }
 0x2b5   :  { %v2011_v35 = vpack.c.bf16 %v1405_v32, %v1404_v21  ;;  %v2017_v4 = vpack.c.bf16 %v1407_v15, %v1406_v46  ;;  %v1582_v0 = vstv %s1581_s5  ;;  %v2060_v47 = vmov 1966171168  }
 0x2b6   :  { %1989 = vmatprep.subr.msk.bf16.mxu0 %vm2824_vm2, %v1987_v26  ;;  %v1598_v49 = vstv %s1723_s6  ;;  %v1602_v57 = vstv %s1726_s15 }
 0x2bc   :  { %1992 = vmatpush3.bf16.xpose.msk.msra.mxu0 %vm2824_vm2, %v1990_v48 }
 0x2bd   :  { %1995 = vmatprep.subr.msk.bf16.mxu0 %vm2824_vm2, %v1993_v59 }
 0x2c4   :  { %1998 = vmatpush3.bf16.xpose.msk.msra.mxu0 %vm2824_vm2, %v1996_v5 }
 0x2c5   :  { %2001 = vmatprep.subr.msk.bf16.mxu0 %vm2824_vm2, %v1999_v38 }
 0x2cc   :  { %2004 = vmatpush3.bf16.xpose.msk.msra.mxu0 %vm2824_vm2, %v2002_v23 }
 0x2cd   :  { %2007 = vmatprep.subr.msk.bf16.mxu0 %vm2824_vm2, %v2005_v53 }
 0x2d4   :  { %2010 = vmatpush3.bf16.xpose.msk.msra.mxu0 %vm2824_vm2, %v2008_v29 }
 0x2d5   :  { %2013 = vmatprep.subr.msk.bf16.mxu0 %vm2824_vm2, %v2011_v35 }
 0x2dc   :  { %2016 = vmatpush3.bf16.xpose.msk.msra.mxu0 %vm2824_vm2, %v2014_v19 }
 0x2dd   :  { %2019 = vmatprep.subr.msk.bf16.mxu0 %vm2824_vm2, %v2017_v4 }
 0x2e4   :  { %2022 = vmatpush3.bf16.xpose.msk.msra.mxu0 %vm2824_vm2, %v2020_v2 }
 0x2e5   :  { %2025 = vmatprep.subr.msk.bf16.mxu0 %vm2824_vm2, %v2811_v34 }
 0x2ec   :  { %2028 = vmatpush3.bf16.xpose.msk.msra.mxu0 %vm2824_vm2, %v2026_v31 }
 0x2f3   :  { %1836 = vmatmul.mubr.msk.f32.vlgmr.msra.gmra.mrb[32].mxu0 %vm403_vm1, %v2767_v51  ;;  %v1609_v51 = vunpack.c.l.s4 %v2060_v47 }
 0x2f5   :  { %v1610_v1 = vunpack.c.0.s8 %v1609_v51 }
 0x2f7   :  { %v1613_v45 = vsub.s32 %v1610_v1, %v2468_v10 }
 0x3c6   :  { %v1576_v18 = vpop.f32.mrb[32].mxu0 }
 0x3c7   :  { %v1583_v60 = vadd.f32 %v1582_v0, %v1576_v18  ;;  %v1578_v33 = vpop.f32.mrb[33].mxu0 }
 0x3c8   :  { %v1584_v37 = vadd.f32 %v1582_v0, %v1578_v33 }
 0x3c9   :  { %v1724_v39 = vmul.f32 -1.442695, %v1583_v60 }
 0x3ca   :  { %v1725_v41 = vmul.f32 -1.442695, %v1584_v37 }
 0x3cb   :  { %2036 = vpow2.f32 %v1724_v39 }
 0x3cc   :  { %2038 = vpow2.f32 %v1725_v41 }
 0x3d5   :  { %v2037_v44 = vpop.eup %2036 }
 0x3d6   :  { %v2039_v56 = vpop.eup %2038  ;;  %v1592_v54 = vadd.f32 1.0, %v2037_v44 }
 0x3d7   :  { %v1593_v34 = vadd.f32 1.0, %v2039_v56 }
 0x3d8   :  { %2040 = vrcp.f32 %v1592_v54 }
 0x3d9   :  { %2042 = vrcp.f32 %v1593_v34 }
 0x3e2   :  { %v2041_v52 = vpop.eup %2040 }
 0x3e3   :  { %v2043_v22 = vpop.eup %2042  ;;  %v1599_v20 = vmul.f32 %v2041_v52, %v1598_v49 }
 0x3e4   :  { %v1600_v27 = vmul.f32 %v2043_v22, %v1598_v49 }
 0x3e5   :  { %v1603_v30 = vadd.f32 %v1602_v57, %v1599_v20 }
 0x3e6   :  { %v1604_v16 = vadd.f32 %v1602_v57, %v1600_v27 }
 0x3e8   :  { %v1607_v24 = vcombine.low %v1603_v30, %v1604_v16 }
 0x3ea   :  { %v1614_v42 = vrot.slane %v1607_v24, %v1613_v45 }
 0x3ec   :  { %v1621_v58 = vrot.slane %v1614_v42, %v1613_v45 }
 0x3ee   :  { %1627 = vst.msk [vmem:[%s2877_s9] sm:$0x3] %vm1625_vm3, %v1621_v58 }
 0x3ef   :  { %1632 = vsyncpa [#allocation3], 1 }

</bundles_post_ra>
